<compile_context>
chip_gen: v7x
topology: tpu7x:2x2x1
jax: 0.10.0
libtpu: 0.0.40
codegen_flags: <defaults>
</compile_context>

<pallas_src>
import functools

import jax
import jax.numpy as jnp
from jax import lax
from jax.experimental import pallas as pl
from jax.experimental.pallas import tpu as pltpu


def _round_up(x, m):
    return (x + m - 1) // m * m


def _pack_gates(a, h, hq):
    """[..., 3*h] -> [..., 3*hq]; each gate zero-padded from h to hq lanes (tight pack)."""
    if h == hq:
        return a
    pad = [(0, 0)] * (a.ndim - 1) + [(0, hq - h)]
    return jnp.concatenate(
        [jnp.pad(a[..., g * h:(g + 1) * h], pad) for g in range(3)], axis=-1)


def _gru_fc_kernel(gi_ref, len_ref, w_hh_ref, b_hn_ref, w_fc_ref, b_fc_ref,
                   out_ref, h_ref, *, hq, tc, unroll):
    t_chunk = pl.program_id(1)

    @pl.when(t_chunk == 0)
    def _():
        h_ref[...] = jnp.zeros_like(h_ref)

    # Loop-invariant values, hoisted once per time chunk (held in vregs/VMEM).
    w_hh = w_hh_ref[...]                                   # (Hq, Cp) bf16
    b_hn = jnp.broadcast_to(b_hn_ref[...], h_ref.shape)    # (Bblk, Hq) f32, hoisted
    lengths = len_ref[...]                                 # (Bblk, 1) int32
    t0 = t_chunk * tc

    def step(i, h):
        # gi = x_t @ W_ih + b_ih (+ folded b_hr/b_hz), packed [r|z|n], bf16 stream.
        gi = gi_ref[i].astype(jnp.float32)                 # (Bblk, Cp)
        gh = jnp.dot(h.astype(jnp.bfloat16), w_hh,
                     preferred_element_type=jnp.float32)   # (Bblk, Cp)
        # PyTorch GRU gate order: r, z, n (tight 32-lane sub-slices of the packed slab).
        r = jax.nn.sigmoid(gi[:, 0:hq] + gh[:, 0:hq])
        z = jax.nn.sigmoid(gi[:, hq:2 * hq] + gh[:, hq:2 * hq])
        n = jnp.tanh(gi[:, 2 * hq:3 * hq] + r * (gh[:, 2 * hq:3 * hq] + b_hn))
        h_new = (1.0 - z) * n + z * h
        # pack_padded_sequence semantics: freeze hidden once t >= length (single select).
        return jnp.where(t0 + i < lengths, h_new, h)

    h_ref[...] = lax.fori_loop(0, tc, step, h_ref[...], unroll=unroll)

    @pl.when(t_chunk == pl.num_programs(1) - 1)
    def _():
        h = h_ref[...]
        # FC (out_dim = 1) as a lane-reduction instead of an N=1 MXU matmul.
        logit = jnp.sum(h * w_fc_ref[...], axis=-1, keepdims=True) + b_fc_ref[...]
        prob = jax.nn.sigmoid(logit)                          # (Bblk, 1)
        out_ref[...] = jnp.broadcast_to(prob, out_ref.shape)  # lane-dense store


def rnn_forward(txt, txt_lengths, params, *, time_chunk=16):
    """txt: [B, T] int32, txt_lengths: [B] int32 -> [B] float32 (sigmoid probs)."""
    B, T = txt.shape
    emb_table = params["embedding"]          # [V, E]
    w_ih = params["w_ih"]                    # [E, 3H]  (pre-transposed)
    w_hh = params["w_hh"]                    # [H, 3H]
    H = w_hh.shape[0]
    Hq = _round_up(H, 8)                     # per-gate width (tight pack, sublane aligned)
    Cp = _round_up(3 * Hq, 128)              # packed gate slab width (lane aligned)

    # ---- batch padding / block selection ----
    # 16-sublane multiple keeps the bf16 gi blocks tile-aligned; Bblk up to 128 feeds
    # the MXU rows (v5e/v6e), and B > 128 yields >= 2 "parallel" blocks for v7x's 2 TCs.
    B_pad = _round_up(max(B, 16), 16)
    if B_pad <= 128:
        Bblk = B_pad
    else:
        Bblk = 128
        B_pad = _round_up(B_pad, Bblk)
    nb = B_pad // Bblk

    # ---- time chunking (amortize grid-step overhead; cap the unroll) ----
    Tc = max(1, min(time_chunk, _round_up(T, 4)))
    T_pad = _round_up(T, Tc)
    nt = T_pad // Tc
    unroll = min(8, Tc)

    # ---- hoist the input projection out of the sequential recurrence ----
    # gi = emb[txt] @ W_ih + b_ih == (emb_table @ W_ih)[txt] + b_ih; additionally fold
    # b_hr / b_hz here (valid: they are outside the r-gated product in the GRU).
    b_ih = params["b_ih"]
    b_hh = params["b_hh"]
    bias_fold = jnp.concatenate(
        [b_ih[:, 0:H] + b_hh[:, 0:H],
         b_ih[:, H:2 * H] + b_hh[:, H:2 * H],
         b_ih[:, 2 * H:3 * H]], axis=-1)                            # (1, 3H)
    table_proj = _pack_gates(emb_table @ w_ih + bias_fold, H, Hq)    # (V, 3Hq)
    gi = table_proj[txt.T]                                           # (T, B, 3Hq) time-major
    gi = jnp.pad(gi, ((0, T_pad - T), (0, B_pad - B), (0, Cp - 3 * Hq)))
    gi = gi.astype(jnp.bfloat16)                                     # bf16 HBM stream

    # lengths only (no mask tensor); padded rows get length 0 -> never update hidden.
    lengths = jnp.pad(txt_lengths.astype(jnp.int32), (0, B_pad - B)).reshape(B_pad, 1)

    # packed, zero-padded recurrent weights (padded lanes/rows stay exactly 0)
    w_hh_p = jnp.pad(_pack_gates(w_hh, H, Hq),
                     ((0, Hq - H), (0, Cp - 3 * Hq))).astype(jnp.bfloat16)   # (Hq, Cp)
    b_hn = jnp.pad(b_hh[:, 2 * H:3 * H], ((0, 0), (0, Hq - H)))              # (1, Hq)
    w_fc = jnp.pad(params["w_fc"][:, 0], (0, Hq - H)).reshape(1, Hq)         # (1, Hq)
    b_fc = params["b_fc"].reshape(1, 1)

    kernel = functools.partial(_gru_fc_kernel, hq=Hq, tc=Tc, unroll=unroll)

    # VMEM budget from actual buffer sizes (double-buffered inputs/outputs) + headroom,
    # clamped to v7x's 64 MiB physical VMEM.
    vmem_bytes = (2 * Tc * Bblk * Cp * 2                 # gi double buffer (bf16)
                  + 2 * Bblk * 4                         # lengths
                  + 2 * (Hq * Cp * 2 + 2 * Hq * 4 + 4)   # weights / biases
                  + 2 * Bblk * 128 * 4                   # output slab
                  + Bblk * Hq * 4)                       # hidden-state scratch
    vmem_limit = int(min(64 * 1024 * 1024, max(4 * 1024 * 1024, 2 * vmem_bytes)))

    out = pl.pallas_call(
        kernel,
        out_shape=jax.ShapeDtypeStruct((B_pad, 128), jnp.float32),
        grid_spec=pltpu.PrefetchScalarGridSpec(
            num_scalar_prefetch=0,
            grid=(nb, nt),                                           # (batch blocks, time chunks)
            in_specs=[
                pl.BlockSpec((Tc, Bblk, Cp), lambda b, t: (t, b, 0)),  # gi chunk (bf16)
                pl.BlockSpec((Bblk, 1), lambda b, t: (b, 0)),          # lengths (int32)
                pl.BlockSpec((Hq, Cp), lambda b, t: (0, 0)),           # W_hh^T (bf16)
                pl.BlockSpec((1, Hq), lambda b, t: (0, 0)),            # b_hn
                pl.BlockSpec((1, Hq), lambda b, t: (0, 0)),            # w_fc row
                pl.BlockSpec((1, 1), lambda b, t: (0, 0)),             # b_fc
            ],
            out_specs=pl.BlockSpec((Bblk, 128), lambda b, t: (b, 0)),
            scratch_shapes=[pltpu.VMEM((Bblk, Hq), jnp.float32)],      # hidden state
        ),
        compiler_params=pltpu.CompilerParams(
            dimension_semantics=("parallel", "arbitrary"),
            vmem_limit_bytes=vmem_limit),
    )(gi, lengths, w_hh_p, b_hn, w_fc, b_fc)

    # PyTorch: sigmoid(fc(hidden)).squeeze() with hidden [1, B, H] -> [B]
    return out[:B, 0]


def rnn_reference(txt, txt_lengths, params):
    """Pure-JAX f32 GRU reference matching the PyTorch module (for self-check)."""
    w_ih, w_hh = params["w_ih"], params["w_hh"]
    b_ih, b_hh = params["b_ih"], params["b_hh"]
    H = w_hh.shape[0]
    B, T = txt.shape
    emb = params["embedding"][txt]            # (B, T, E)
    h = jnp.zeros((B, H), jnp.float32)
    for t in range(T):
        gi = emb[:, t] @ w_ih + b_ih
        gh = h @ w_hh + b_hh
        r = jax.nn.sigmoid(gi[:, 0:H] + gh[:, 0:H])
        z = jax.nn.sigmoid(gi[:, H:2 * H] + gh[:, H:2 * H])
        n = jnp.tanh(gi[:, 2 * H:] + r * gh[:, 2 * H:])
        h_new = (1.0 - z) * n + z * h
        h = jnp.where((t < txt_lengths)[:, None], h_new, h)
    logit = h @ params["w_fc"] + params["b_fc"]
    return jax.nn.sigmoid(logit)[:, 0]


def init_params(key, vocab_size, emd_dim, hidden_dim, out_dim):
    ks = jax.random.split(key, 7)
    s = 0.1
    return {
        "embedding": jax.random.normal(ks[0], (vocab_size, emd_dim), jnp.float32) * s,
        # stored pre-transposed: x @ w_ih == x @ W_ih_l0.T
        "w_ih": jax.random.normal(ks[1], (emd_dim, 3 * hidden_dim), jnp.float32) * s,
        "w_hh": jax.random.normal(ks[2], (hidden_dim, 3 * hidden_dim), jnp.float32) * s,
        "b_ih": jax.random.normal(ks[3], (1, 3 * hidden_dim), jnp.float32) * s,
        "b_hh": jax.random.normal(ks[4], (1, 3 * hidden_dim), jnp.float32) * s,
        "w_fc": jax.random.normal(ks[5], (hidden_dim, out_dim), jnp.float32) * s,
        "b_fc": jax.random.normal(ks[6], (1, out_dim), jnp.float32) * s,
    }


if __name__ == "__main__":
    # Small, deterministic example consistent with the module
    # (emd_dim=100, hidden_dim=32, n_layers=1, out_dim=1).
    vocab_size = 50
    emd_dim = 100
    hidden_dim = 32
    out_dim = 1
    B, T = 4, 8

    key = jax.random.PRNGKey(0)
    k_tok, k_par = jax.random.split(key)

    txt = jax.random.randint(k_tok, (B, T), 0, vocab_size, dtype=jnp.int32)
    # pack_padded_sequence default requires descending lengths.
    txt_lengths = jnp.array([8, 6, 5, 3], dtype=jnp.int32)

    params = init_params(k_par, vocab_size, emd_dim, hidden_dim, out_dim)

    out = rnn_forward(txt, txt_lengths, params)
    jax.block_until_ready(out)
    assert out.shape == (B,)

    ref = rnn_reference(txt, txt_lengths, params)
    assert float(jnp.max(jnp.abs(out - ref))) < 2e-2, (out, ref)
    print("KERNEL_OK")
</pallas_src>

<mosaic_0001>
module attributes {stable_mosaic.version = 11 : i64} {
  func.func @_gru_fc_kernel(%arg0: i32, %arg1: i32, %arg2: memref<8x16x128xbf16, #tpu.memory_space<vmem>>, %arg3: memref<16x1xi32, #tpu.memory_space<vmem>>, %arg4: memref<32x128xbf16, #tpu.memory_space<vmem>>, %arg5: memref<1x32xf32, #tpu.memory_space<vmem>>, %arg6: memref<1x32xf32, #tpu.memory_space<vmem>>, %arg7: memref<1x1xf32, #tpu.memory_space<vmem>>, %arg8: memref<16x128xf32, #tpu.memory_space<vmem>>, %arg9: memref<16x32xf32, #tpu.memory_space<vmem>>) attributes {dimension_semantics = [#tpu.dimension_semantics<parallel>, #tpu.dimension_semantics<arbitrary>], iteration_bounds = array<i64: 1, 1>, scalar_prefetch = 0 : i64, scratch_operands = 1 : i64, tpu.core_type = #tpu.core_type<tc>, window_params = [{transform_indices = @transform_0, window_bounds = array<i64: 8, 16, 128>}, {transform_indices = @transform_1, window_bounds = array<i64: 16, 1>}, {pipeline_mode = #tpu.pipeline_mode<synchronous>, transform_indices = @transform_2, window_bounds = array<i64: 32, 128>}, {pipeline_mode = #tpu.pipeline_mode<synchronous>, transform_indices = @transform_3, window_bounds = array<i64: 1, 32>}, {pipeline_mode = #tpu.pipeline_mode<synchronous>, transform_indices = @transform_4, window_bounds = array<i64: 1, 32>}, {pipeline_mode = #tpu.pipeline_mode<synchronous>, transform_indices = @transform_5, window_bounds = array<i64: 1, 1>}, {transform_indices = @transform_6, window_bounds = array<i64: 16, 128>}]} {
    %c0_i32 = arith.constant 0 : i32
    %0 = arith.cmpi eq, %arg1, %c0_i32 : i32
    %1 = arith.extui %0 : i1 to i32
    %c0_i32_0 = arith.constant 0 : i32
    %2 = arith.cmpi ne, %1, %c0_i32_0 : i32
    scf.if %2 {
      %cst_61 = arith.constant 0.000000e+00 : f32
      %326 = vector.broadcast %cst_61 : f32 to vector<16x32xf32>
      %c0_62 = arith.constant 0 : index
      %c0_63 = arith.constant 0 : index
      %327 = vector.load %arg9[%c0_62, %c0_63] : memref<16x32xf32, #tpu.memory_space<vmem>>, vector<16x32xf32>
      tpu.vector_store %arg9[%c0_62, %c0_63], %326 {strides = array<i32>} : memref<16x32xf32, #tpu.memory_space<vmem>>, vector<16x32xf32>,
    } else {
    }
    %c0 = arith.constant 0 : index
    %c0_1 = arith.constant 0 : index
    %3 = vector.load %arg4[%c0, %c0_1] : memref<32x128xbf16, #tpu.memory_space<vmem>>, vector<32x128xbf16>
    %c0_2 = arith.constant 0 : index
    %c0_3 = arith.constant 0 : index
    %4 = vector.load %arg5[%c0_2, %c0_3] : memref<1x32xf32, #tpu.memory_space<vmem>>, vector<1x32xf32>
    %5 = vector.shape_cast %4 : vector<1x32xf32> to vector<1x32xf32>
    %6 = vector.broadcast %5 : vector<1x32xf32> to vector<16x32xf32>
    %c0_4 = arith.constant 0 : index
    %c0_5 = arith.constant 0 : index
    %7 = vector.load %arg3[%c0_4, %c0_5] : memref<16x1xi32, #tpu.memory_space<vmem>>, vector<16x1xi32>
    %c8_i32 = arith.constant 8 : i32
    %8 = arith.muli %arg1, %c8_i32 : i32
    %c0_6 = arith.constant 0 : index
    %c0_7 = arith.constant 0 : index
    %9 = vector.load %arg9[%c0_6, %c0_7] : memref<16x32xf32, #tpu.memory_space<vmem>>, vector<16x32xf32>
    %c0_i32_8 = arith.constant 0 : i32
    %10 = arith.index_cast %c0_i32_8 : i32 to index
    %c0_9 = arith.constant 0 : index
    %c0_10 = arith.constant 0 : index
    %11 = vector.load %arg2[%10, %c0_9, %c0_10] : memref<8x16x128xbf16, #tpu.memory_space<vmem>>, vector<1x16x128xbf16>
    %12 = vector.shape_cast %11 : vector<1x16x128xbf16> to vector<16x128xbf16>
    %13 = arith.extf %12 : vector<16x128xbf16> to vector<16x128xf32>
    %14 = arith.truncf %9 : vector<16x32xf32> to vector<16x32xbf16>
    %cst = arith.constant dense<0.000000e+00> : vector<16x128xf32>
    %15 = tpu.matmul %14, %3, %cst {dimension_numbers = #tpu.dot_dimension_numbers<[1], [0], [0], [1], [0, 0, 1, 1], [], []>} : vector<16x32xbf16>, vector<32x128xbf16>, vector<16x128xf32> -> vector<16x128xf32>
    %16 = vector.extract_strided_slice %13 {offsets = [0, 0], sizes = [16, 32], strides = [1, 1]} : vector<16x128xf32> to vector<16x32xf32>
    %17 = vector.extract_strided_slice %15 {offsets = [0, 0], sizes = [16, 32], strides = [1, 1]} : vector<16x128xf32> to vector<16x32xf32>
    %18 = arith.addf %16, %17 : vector<16x32xf32>
    %19 = arith.negf %18 : vector<16x32xf32>
    %20 = math.exp %19 : vector<16x32xf32>
    %cst_11 = arith.constant 1.000000e+00 : f32
    %21 = vector.broadcast %cst_11 : f32 to vector<16x32xf32>
    %22 = arith.addf %21, %20 : vector<16x32xf32>
    %23 = arith.divf %21, %22 : vector<16x32xf32>
    %24 = vector.extract_strided_slice %13 {offsets = [0, 32], sizes = [16, 32], strides = [1, 1]} : vector<16x128xf32> to vector<16x32xf32>
    %25 = vector.extract_strided_slice %15 {offsets = [0, 32], sizes = [16, 32], strides = [1, 1]} : vector<16x128xf32> to vector<16x32xf32>
    %26 = arith.addf %24, %25 : vector<16x32xf32>
    %27 = arith.negf %26 : vector<16x32xf32>
    %28 = math.exp %27 : vector<16x32xf32>
    %cst_12 = arith.constant 1.000000e+00 : f32
    %29 = vector.broadcast %cst_12 : f32 to vector<16x32xf32>
    %30 = arith.addf %29, %28 : vector<16x32xf32>
    %31 = arith.divf %29, %30 : vector<16x32xf32>
    %32 = vector.extract_strided_slice %13 {offsets = [0, 64], sizes = [16, 32], strides = [1, 1]} : vector<16x128xf32> to vector<16x32xf32>
    %33 = vector.extract_strided_slice %15 {offsets = [0, 64], sizes = [16, 32], strides = [1, 1]} : vector<16x128xf32> to vector<16x32xf32>
    %34 = arith.addf %33, %6 : vector<16x32xf32>
    %35 = arith.mulf %23, %34 : vector<16x32xf32>
    %36 = arith.addf %32, %35 : vector<16x32xf32>
    %37 = math.tanh %36 : vector<16x32xf32>
    %cst_13 = arith.constant 1.000000e+00 : f32
    %38 = vector.broadcast %cst_13 : f32 to vector<16x32xf32>
    %39 = arith.subf %38, %31 : vector<16x32xf32>
    %40 = arith.mulf %39, %37 : vector<16x32xf32>
    %41 = arith.mulf %31, %9 : vector<16x32xf32>
    %42 = arith.addf %40, %41 : vector<16x32xf32>
    %43 = arith.addi %8, %c0_i32_8 : i32
    %44 = vector.broadcast %43 : i32 to vector<16x1xi32>
    %45 = arith.cmpi slt, %44, %7 : vector<16x1xi32>
    %46 = vector.shape_cast %45 : vector<16x1xi1> to vector<16x1xi1>
    %47 = vector.broadcast %46 : vector<16x1xi1> to vector<16x32xi1>
    %48 = arith.select %47, %42, %9 : vector<16x32xi1>, vector<16x32xf32>
    %c1_i32 = arith.constant 1 : i32
    %49 = arith.index_cast %c1_i32 : i32 to index
    %c0_14 = arith.constant 0 : index
    %c0_15 = arith.constant 0 : index
    %50 = vector.load %arg2[%49, %c0_14, %c0_15] : memref<8x16x128xbf16, #tpu.memory_space<vmem>>, vector<1x16x128xbf16>
    %51 = vector.shape_cast %50 : vector<1x16x128xbf16> to vector<16x128xbf16>
    %52 = arith.extf %51 : vector<16x128xbf16> to vector<16x128xf32>
    %53 = arith.truncf %48 : vector<16x32xf32> to vector<16x32xbf16>
    %cst_16 = arith.constant dense<0.000000e+00> : vector<16x128xf32>
    %54 = tpu.matmul %53, %3, %cst_16 {dimension_numbers = #tpu.dot_dimension_numbers<[1], [0], [0], [1], [0, 0, 1, 1], [], []>} : vector<16x32xbf16>, vector<32x128xbf16>, vector<16x128xf32> -> vector<16x128xf32>
    %55 = vector.extract_strided_slice %52 {offsets = [0, 0], sizes = [16, 32], strides = [1, 1]} : vector<16x128xf32> to vector<16x32xf32>
    %56 = vector.extract_strided_slice %54 {offsets = [0, 0], sizes = [16, 32], strides = [1, 1]} : vector<16x128xf32> to vector<16x32xf32>
    %57 = arith.addf %55, %56 : vector<16x32xf32>
    %58 = arith.negf %57 : vector<16x32xf32>
    %59 = math.exp %58 : vector<16x32xf32>
    %cst_17 = arith.constant 1.000000e+00 : f32
    %60 = vector.broadcast %cst_17 : f32 to vector<16x32xf32>
    %61 = arith.addf %60, %59 : vector<16x32xf32>
    %62 = arith.divf %60, %61 : vector<16x32xf32>
    %63 = vector.extract_strided_slice %52 {offsets = [0, 32], sizes = [16, 32], strides = [1, 1]} : vector<16x128xf32> to vector<16x32xf32>
    %64 = vector.extract_strided_slice %54 {offsets = [0, 32], sizes = [16, 32], strides = [1, 1]} : vector<16x128xf32> to vector<16x32xf32>
    %65 = arith.addf %63, %64 : vector<16x32xf32>
    %66 = arith.negf %65 : vector<16x32xf32>
    %67 = math.exp %66 : vector<16x32xf32>
    %cst_18 = arith.constant 1.000000e+00 : f32
    %68 = vector.broadcast %cst_18 : f32 to vector<16x32xf32>
    %69 = arith.addf %68, %67 : vector<16x32xf32>
    %70 = arith.divf %68, %69 : vector<16x32xf32>
    %71 = vector.extract_strided_slice %52 {offsets = [0, 64], sizes = [16, 32], strides = [1, 1]} : vector<16x128xf32> to vector<16x32xf32>
    %72 = vector.extract_strided_slice %54 {offsets = [0, 64], sizes = [16, 32], strides = [1, 1]} : vector<16x128xf32> to vector<16x32xf32>
    %73 = arith.addf %72, %6 : vector<16x32xf32>
    %74 = arith.mulf %62, %73 : vector<16x32xf32>
    %75 = arith.addf %71, %74 : vector<16x32xf32>
    %76 = math.tanh %75 : vector<16x32xf32>
    %cst_19 = arith.constant 1.000000e+00 : f32
    %77 = vector.broadcast %cst_19 : f32 to vector<16x32xf32>
    %78 = arith.subf %77, %70 : vector<16x32xf32>
    %79 = arith.mulf %78, %76 : vector<16x32xf32>
    %80 = arith.mulf %70, %48 : vector<16x32xf32>
    %81 = arith.addf %79, %80 : vector<16x32xf32>
    %82 = arith.addi %8, %c1_i32 : i32
    %83 = vector.broadcast %82 : i32 to vector<16x1xi32>
    %84 = arith.cmpi slt, %83, %7 : vector<16x1xi32>
    %85 = vector.shape_cast %84 : vector<16x1xi1> to vector<16x1xi1>
    %86 = vector.broadcast %85 : vector<16x1xi1> to vector<16x32xi1>
    %87 = arith.select %86, %81, %48 : vector<16x32xi1>, vector<16x32xf32>
    %c2_i32 = arith.constant 2 : i32
    %88 = arith.index_cast %c2_i32 : i32 to index
    %c0_20 = arith.constant 0 : index
    %c0_21 = arith.constant 0 : index
    %89 = vector.load %arg2[%88, %c0_20, %c0_21] : memref<8x16x128xbf16, #tpu.memory_space<vmem>>, vector<1x16x128xbf16>
    %90 = vector.shape_cast %89 : vector<1x16x128xbf16> to vector<16x128xbf16>
    %91 = arith.extf %90 : vector<16x128xbf16> to vector<16x128xf32>
    %92 = arith.truncf %87 : vector<16x32xf32> to vector<16x32xbf16>
    %cst_22 = arith.constant dense<0.000000e+00> : vector<16x128xf32>
    %93 = tpu.matmul %92, %3, %cst_22 {dimension_numbers = #tpu.dot_dimension_numbers<[1], [0], [0], [1], [0, 0, 1, 1], [], []>} : vector<16x32xbf16>, vector<32x128xbf16>, vector<16x128xf32> -> vector<16x128xf32>
    %94 = vector.extract_strided_slice %91 {offsets = [0, 0], sizes = [16, 32], strides = [1, 1]} : vector<16x128xf32> to vector<16x32xf32>
    %95 = vector.extract_strided_slice %93 {offsets = [0, 0], sizes = [16, 32], strides = [1, 1]} : vector<16x128xf32> to vector<16x32xf32>
    %96 = arith.addf %94, %95 : vector<16x32xf32>
    %97 = arith.negf %96 : vector<16x32xf32>
    %98 = math.exp %97 : vector<16x32xf32>
    %cst_23 = arith.constant 1.000000e+00 : f32
    %99 = vector.broadcast %cst_23 : f32 to vector<16x32xf32>
    %100 = arith.addf %99, %98 : vector<16x32xf32>
    %101 = arith.divf %99, %100 : vector<16x32xf32>
    %102 = vector.extract_strided_slice %91 {offsets = [0, 32], sizes = [16, 32], strides = [1, 1]} : vector<16x128xf32> to vector<16x32xf32>
    %103 = vector.extract_strided_slice %93 {offsets = [0, 32], sizes = [16, 32], strides = [1, 1]} : vector<16x128xf32> to vector<16x32xf32>
    %104 = arith.addf %102, %103 : vector<16x32xf32>
    %105 = arith.negf %104 : vector<16x32xf32>
    %106 = math.exp %105 : vector<16x32xf32>
    %cst_24 = arith.constant 1.000000e+00 : f32
    %107 = vector.broadcast %cst_24 : f32 to vector<16x32xf32>
    %108 = arith.addf %107, %106 : vector<16x32xf32>
    %109 = arith.divf %107, %108 : vector<16x32xf32>
    %110 = vector.extract_strided_slice %91 {offsets = [0, 64], sizes = [16, 32], strides = [1, 1]} : vector<16x128xf32> to vector<16x32xf32>
    %111 = vector.extract_strided_slice %93 {offsets = [0, 64], sizes = [16, 32], strides = [1, 1]} : vector<16x128xf32> to vector<16x32xf32>
    %112 = arith.addf %111, %6 : vector<16x32xf32>
    %113 = arith.mulf %101, %112 : vector<16x32xf32>
    %114 = arith.addf %110, %113 : vector<16x32xf32>
    %115 = math.tanh %114 : vector<16x32xf32>
    %cst_25 = arith.constant 1.000000e+00 : f32
    %116 = vector.broadcast %cst_25 : f32 to vector<16x32xf32>
    %117 = arith.subf %116, %109 : vector<16x32xf32>
    %118 = arith.mulf %117, %115 : vector<16x32xf32>
    %119 = arith.mulf %109, %87 : vector<16x32xf32>
    %120 = arith.addf %118, %119 : vector<16x32xf32>
    %121 = arith.addi %8, %c2_i32 : i32
    %122 = vector.broadcast %121 : i32 to vector<16x1xi32>
    %123 = arith.cmpi slt, %122, %7 : vector<16x1xi32>
    %124 = vector.shape_cast %123 : vector<16x1xi1> to vector<16x1xi1>
    %125 = vector.broadcast %124 : vector<16x1xi1> to vector<16x32xi1>
    %126 = arith.select %125, %120, %87 : vector<16x32xi1>, vector<16x32xf32>
    %c3_i32 = arith.constant 3 : i32
    %127 = arith.index_cast %c3_i32 : i32 to index
    %c0_26 = arith.constant 0 : index
    %c0_27 = arith.constant 0 : index
    %128 = vector.load %arg2[%127, %c0_26, %c0_27] : memref<8x16x128xbf16, #tpu.memory_space<vmem>>, vector<1x16x128xbf16>
    %129 = vector.shape_cast %128 : vector<1x16x128xbf16> to vector<16x128xbf16>
    %130 = arith.extf %129 : vector<16x128xbf16> to vector<16x128xf32>
    %131 = arith.truncf %126 : vector<16x32xf32> to vector<16x32xbf16>
    %cst_28 = arith.constant dense<0.000000e+00> : vector<16x128xf32>
    %132 = tpu.matmul %131, %3, %cst_28 {dimension_numbers = #tpu.dot_dimension_numbers<[1], [0], [0], [1], [0, 0, 1, 1], [], []>} : vector<16x32xbf16>, vector<32x128xbf16>, vector<16x128xf32> -> vector<16x128xf32>
    %133 = vector.extract_strided_slice %130 {offsets = [0, 0], sizes = [16, 32], strides = [1, 1]} : vector<16x128xf32> to vector<16x32xf32>
    %134 = vector.extract_strided_slice %132 {offsets = [0, 0], sizes = [16, 32], strides = [1, 1]} : vector<16x128xf32> to vector<16x32xf32>
    %135 = arith.addf %133, %134 : vector<16x32xf32>
    %136 = arith.negf %135 : vector<16x32xf32>
    %137 = math.exp %136 : vector<16x32xf32>
    %cst_29 = arith.constant 1.000000e+00 : f32
    %138 = vector.broadcast %cst_29 : f32 to vector<16x32xf32>
    %139 = arith.addf %138, %137 : vector<16x32xf32>
    %140 = arith.divf %138, %139 : vector<16x32xf32>
    %141 = vector.extract_strided_slice %130 {offsets = [0, 32], sizes = [16, 32], strides = [1, 1]} : vector<16x128xf32> to vector<16x32xf32>
    %142 = vector.extract_strided_slice %132 {offsets = [0, 32], sizes = [16, 32], strides = [1, 1]} : vector<16x128xf32> to vector<16x32xf32>
    %143 = arith.addf %141, %142 : vector<16x32xf32>
    %144 = arith.negf %143 : vector<16x32xf32>
    %145 = math.exp %144 : vector<16x32xf32>
    %cst_30 = arith.constant 1.000000e+00 : f32
    %146 = vector.broadcast %cst_30 : f32 to vector<16x32xf32>
    %147 = arith.addf %146, %145 : vector<16x32xf32>
    %148 = arith.divf %146, %147 : vector<16x32xf32>
    %149 = vector.extract_strided_slice %130 {offsets = [0, 64], sizes = [16, 32], strides = [1, 1]} : vector<16x128xf32> to vector<16x32xf32>
    %150 = vector.extract_strided_slice %132 {offsets = [0, 64], sizes = [16, 32], strides = [1, 1]} : vector<16x128xf32> to vector<16x32xf32>
    %151 = arith.addf %150, %6 : vector<16x32xf32>
    %152 = arith.mulf %140, %151 : vector<16x32xf32>
    %153 = arith.addf %149, %152 : vector<16x32xf32>
    %154 = math.tanh %153 : vector<16x32xf32>
    %cst_31 = arith.constant 1.000000e+00 : f32
    %155 = vector.broadcast %cst_31 : f32 to vector<16x32xf32>
    %156 = arith.subf %155, %148 : vector<16x32xf32>
    %157 = arith.mulf %156, %154 : vector<16x32xf32>
    %158 = arith.mulf %148, %126 : vector<16x32xf32>
    %159 = arith.addf %157, %158 : vector<16x32xf32>
    %160 = arith.addi %8, %c3_i32 : i32
    %161 = vector.broadcast %160 : i32 to vector<16x1xi32>
    %162 = arith.cmpi slt, %161, %7 : vector<16x1xi32>
    %163 = vector.shape_cast %162 : vector<16x1xi1> to vector<16x1xi1>
    %164 = vector.broadcast %163 : vector<16x1xi1> to vector<16x32xi1>
    %165 = arith.select %164, %159, %126 : vector<16x32xi1>, vector<16x32xf32>
    %c4_i32 = arith.constant 4 : i32
    %166 = arith.index_cast %c4_i32 : i32 to index
    %c0_32 = arith.constant 0 : index
    %c0_33 = arith.constant 0 : index
    %167 = vector.load %arg2[%166, %c0_32, %c0_33] : memref<8x16x128xbf16, #tpu.memory_space<vmem>>, vector<1x16x128xbf16>
    %168 = vector.shape_cast %167 : vector<1x16x128xbf16> to vector<16x128xbf16>
    %169 = arith.extf %168 : vector<16x128xbf16> to vector<16x128xf32>
    %170 = arith.truncf %165 : vector<16x32xf32> to vector<16x32xbf16>
    %cst_34 = arith.constant dense<0.000000e+00> : vector<16x128xf32>
    %171 = tpu.matmul %170, %3, %cst_34 {dimension_numbers = #tpu.dot_dimension_numbers<[1], [0], [0], [1], [0, 0, 1, 1], [], []>} : vector<16x32xbf16>, vector<32x128xbf16>, vector<16x128xf32> -> vector<16x128xf32>
    %172 = vector.extract_strided_slice %169 {offsets = [0, 0], sizes = [16, 32], strides = [1, 1]} : vector<16x128xf32> to vector<16x32xf32>
    %173 = vector.extract_strided_slice %171 {offsets = [0, 0], sizes = [16, 32], strides = [1, 1]} : vector<16x128xf32> to vector<16x32xf32>
    %174 = arith.addf %172, %173 : vector<16x32xf32>
    %175 = arith.negf %174 : vector<16x32xf32>
    %176 = math.exp %175 : vector<16x32xf32>
    %cst_35 = arith.constant 1.000000e+00 : f32
    %177 = vector.broadcast %cst_35 : f32 to vector<16x32xf32>
    %178 = arith.addf %177, %176 : vector<16x32xf32>
    %179 = arith.divf %177, %178 : vector<16x32xf32>
    %180 = vector.extract_strided_slice %169 {offsets = [0, 32], sizes = [16, 32], strides = [1, 1]} : vector<16x128xf32> to vector<16x32xf32>
    %181 = vector.extract_strided_slice %171 {offsets = [0, 32], sizes = [16, 32], strides = [1, 1]} : vector<16x128xf32> to vector<16x32xf32>
    %182 = arith.addf %180, %181 : vector<16x32xf32>
    %183 = arith.negf %182 : vector<16x32xf32>
    %184 = math.exp %183 : vector<16x32xf32>
    %cst_36 = arith.constant 1.000000e+00 : f32
    %185 = vector.broadcast %cst_36 : f32 to vector<16x32xf32>
    %186 = arith.addf %185, %184 : vector<16x32xf32>
    %187 = arith.divf %185, %186 : vector<16x32xf32>
    %188 = vector.extract_strided_slice %169 {offsets = [0, 64], sizes = [16, 32], strides = [1, 1]} : vector<16x128xf32> to vector<16x32xf32>
    %189 = vector.extract_strided_slice %171 {offsets = [0, 64], sizes = [16, 32], strides = [1, 1]} : vector<16x128xf32> to vector<16x32xf32>
    %190 = arith.addf %189, %6 : vector<16x32xf32>
    %191 = arith.mulf %179, %190 : vector<16x32xf32>
    %192 = arith.addf %188, %191 : vector<16x32xf32>
    %193 = math.tanh %192 : vector<16x32xf32>
    %cst_37 = arith.constant 1.000000e+00 : f32
    %194 = vector.broadcast %cst_37 : f32 to vector<16x32xf32>
    %195 = arith.subf %194, %187 : vector<16x32xf32>
    %196 = arith.mulf %195, %193 : vector<16x32xf32>
    %197 = arith.mulf %187, %165 : vector<16x32xf32>
    %198 = arith.addf %196, %197 : vector<16x32xf32>
    %199 = arith.addi %8, %c4_i32 : i32
    %200 = vector.broadcast %199 : i32 to vector<16x1xi32>
    %201 = arith.cmpi slt, %200, %7 : vector<16x1xi32>
    %202 = vector.shape_cast %201 : vector<16x1xi1> to vector<16x1xi1>
    %203 = vector.broadcast %202 : vector<16x1xi1> to vector<16x32xi1>
    %204 = arith.select %203, %198, %165 : vector<16x32xi1>, vector<16x32xf32>
    %c5_i32 = arith.constant 5 : i32
    %205 = arith.index_cast %c5_i32 : i32 to index
    %c0_38 = arith.constant 0 : index
    %c0_39 = arith.constant 0 : index
    %206 = vector.load %arg2[%205, %c0_38, %c0_39] : memref<8x16x128xbf16, #tpu.memory_space<vmem>>, vector<1x16x128xbf16>
    %207 = vector.shape_cast %206 : vector<1x16x128xbf16> to vector<16x128xbf16>
    %208 = arith.extf %207 : vector<16x128xbf16> to vector<16x128xf32>
    %209 = arith.truncf %204 : vector<16x32xf32> to vector<16x32xbf16>
    %cst_40 = arith.constant dense<0.000000e+00> : vector<16x128xf32>
    %210 = tpu.matmul %209, %3, %cst_40 {dimension_numbers = #tpu.dot_dimension_numbers<[1], [0], [0], [1], [0, 0, 1, 1], [], []>} : vector<16x32xbf16>, vector<32x128xbf16>, vector<16x128xf32> -> vector<16x128xf32>
    %211 = vector.extract_strided_slice %208 {offsets = [0, 0], sizes = [16, 32], strides = [1, 1]} : vector<16x128xf32> to vector<16x32xf32>
    %212 = vector.extract_strided_slice %210 {offsets = [0, 0], sizes = [16, 32], strides = [1, 1]} : vector<16x128xf32> to vector<16x32xf32>
    %213 = arith.addf %211, %212 : vector<16x32xf32>
    %214 = arith.negf %213 : vector<16x32xf32>
    %215 = math.exp %214 : vector<16x32xf32>
    %cst_41 = arith.constant 1.000000e+00 : f32
    %216 = vector.broadcast %cst_41 : f32 to vector<16x32xf32>
    %217 = arith.addf %216, %215 : vector<16x32xf32>
    %218 = arith.divf %216, %217 : vector<16x32xf32>
    %219 = vector.extract_strided_slice %208 {offsets = [0, 32], sizes = [16, 32], strides = [1, 1]} : vector<16x128xf32> to vector<16x32xf32>
    %220 = vector.extract_strided_slice %210 {offsets = [0, 32], sizes = [16, 32], strides = [1, 1]} : vector<16x128xf32> to vector<16x32xf32>
    %221 = arith.addf %219, %220 : vector<16x32xf32>
    %222 = arith.negf %221 : vector<16x32xf32>
    %223 = math.exp %222 : vector<16x32xf32>
    %cst_42 = arith.constant 1.000000e+00 : f32
    %224 = vector.broadcast %cst_42 : f32 to vector<16x32xf32>
    %225 = arith.addf %224, %223 : vector<16x32xf32>
    %226 = arith.divf %224, %225 : vector<16x32xf32>
    %227 = vector.extract_strided_slice %208 {offsets = [0, 64], sizes = [16, 32], strides = [1, 1]} : vector<16x128xf32> to vector<16x32xf32>
    %228 = vector.extract_strided_slice %210 {offsets = [0, 64], sizes = [16, 32], strides = [1, 1]} : vector<16x128xf32> to vector<16x32xf32>
    %229 = arith.addf %228, %6 : vector<16x32xf32>
    %230 = arith.mulf %218, %229 : vector<16x32xf32>
    %231 = arith.addf %227, %230 : vector<16x32xf32>
    %232 = math.tanh %231 : vector<16x32xf32>
    %cst_43 = arith.constant 1.000000e+00 : f32
    %233 = vector.broadcast %cst_43 : f32 to vector<16x32xf32>
    %234 = arith.subf %233, %226 : vector<16x32xf32>
    %235 = arith.mulf %234, %232 : vector<16x32xf32>
    %236 = arith.mulf %226, %204 : vector<16x32xf32>
    %237 = arith.addf %235, %236 : vector<16x32xf32>
    %238 = arith.addi %8, %c5_i32 : i32
    %239 = vector.broadcast %238 : i32 to vector<16x1xi32>
    %240 = arith.cmpi slt, %239, %7 : vector<16x1xi32>
    %241 = vector.shape_cast %240 : vector<16x1xi1> to vector<16x1xi1>
    %242 = vector.broadcast %241 : vector<16x1xi1> to vector<16x32xi1>
    %243 = arith.select %242, %237, %204 : vector<16x32xi1>, vector<16x32xf32>
    %c6_i32 = arith.constant 6 : i32
    %244 = arith.index_cast %c6_i32 : i32 to index
    %c0_44 = arith.constant 0 : index
    %c0_45 = arith.constant 0 : index
    %245 = vector.load %arg2[%244, %c0_44, %c0_45] : memref<8x16x128xbf16, #tpu.memory_space<vmem>>, vector<1x16x128xbf16>
    %246 = vector.shape_cast %245 : vector<1x16x128xbf16> to vector<16x128xbf16>
    %247 = arith.extf %246 : vector<16x128xbf16> to vector<16x128xf32>
    %248 = arith.truncf %243 : vector<16x32xf32> to vector<16x32xbf16>
    %cst_46 = arith.constant dense<0.000000e+00> : vector<16x128xf32>
    %249 = tpu.matmul %248, %3, %cst_46 {dimension_numbers = #tpu.dot_dimension_numbers<[1], [0], [0], [1], [0, 0, 1, 1], [], []>} : vector<16x32xbf16>, vector<32x128xbf16>, vector<16x128xf32> -> vector<16x128xf32>
    %250 = vector.extract_strided_slice %247 {offsets = [0, 0], sizes = [16, 32], strides = [1, 1]} : vector<16x128xf32> to vector<16x32xf32>
    %251 = vector.extract_strided_slice %249 {offsets = [0, 0], sizes = [16, 32], strides = [1, 1]} : vector<16x128xf32> to vector<16x32xf32>
    %252 = arith.addf %250, %251 : vector<16x32xf32>
    %253 = arith.negf %252 : vector<16x32xf32>
    %254 = math.exp %253 : vector<16x32xf32>
    %cst_47 = arith.constant 1.000000e+00 : f32
    %255 = vector.broadcast %cst_47 : f32 to vector<16x32xf32>
    %256 = arith.addf %255, %254 : vector<16x32xf32>
    %257 = arith.divf %255, %256 : vector<16x32xf32>
    %258 = vector.extract_strided_slice %247 {offsets = [0, 32], sizes = [16, 32], strides = [1, 1]} : vector<16x128xf32> to vector<16x32xf32>
    %259 = vector.extract_strided_slice %249 {offsets = [0, 32], sizes = [16, 32], strides = [1, 1]} : vector<16x128xf32> to vector<16x32xf32>
    %260 = arith.addf %258, %259 : vector<16x32xf32>
    %261 = arith.negf %260 : vector<16x32xf32>
    %262 = math.exp %261 : vector<16x32xf32>
    %cst_48 = arith.constant 1.000000e+00 : f32
    %263 = vector.broadcast %cst_48 : f32 to vector<16x32xf32>
    %264 = arith.addf %263, %262 : vector<16x32xf32>
    %265 = arith.divf %263, %264 : vector<16x32xf32>
    %266 = vector.extract_strided_slice %247 {offsets = [0, 64], sizes = [16, 32], strides = [1, 1]} : vector<16x128xf32> to vector<16x32xf32>
    %267 = vector.extract_strided_slice %249 {offsets = [0, 64], sizes = [16, 32], strides = [1, 1]} : vector<16x128xf32> to vector<16x32xf32>
    %268 = arith.addf %267, %6 : vector<16x32xf32>
    %269 = arith.mulf %257, %268 : vector<16x32xf32>
    %270 = arith.addf %266, %269 : vector<16x32xf32>
    %271 = math.tanh %270 : vector<16x32xf32>
    %cst_49 = arith.constant 1.000000e+00 : f32
    %272 = vector.broadcast %cst_49 : f32 to vector<16x32xf32>
    %273 = arith.subf %272, %265 : vector<16x32xf32>
    %274 = arith.mulf %273, %271 : vector<16x32xf32>
    %275 = arith.mulf %265, %243 : vector<16x32xf32>
    %276 = arith.addf %274, %275 : vector<16x32xf32>
    %277 = arith.addi %8, %c6_i32 : i32
    %278 = vector.broadcast %277 : i32 to vector<16x1xi32>
    %279 = arith.cmpi slt, %278, %7 : vector<16x1xi32>
    %280 = vector.shape_cast %279 : vector<16x1xi1> to vector<16x1xi1>
    %281 = vector.broadcast %280 : vector<16x1xi1> to vector<16x32xi1>
    %282 = arith.select %281, %276, %243 : vector<16x32xi1>, vector<16x32xf32>
    %c7_i32 = arith.constant 7 : i32
    %283 = arith.index_cast %c7_i32 : i32 to index
    %c0_50 = arith.constant 0 : index
    %c0_51 = arith.constant 0 : index
    %284 = vector.load %arg2[%283, %c0_50, %c0_51] : memref<8x16x128xbf16, #tpu.memory_space<vmem>>, vector<1x16x128xbf16>
    %285 = vector.shape_cast %284 : vector<1x16x128xbf16> to vector<16x128xbf16>
    %286 = arith.extf %285 : vector<16x128xbf16> to vector<16x128xf32>
    %287 = arith.truncf %282 : vector<16x32xf32> to vector<16x32xbf16>
    %cst_52 = arith.constant dense<0.000000e+00> : vector<16x128xf32>
    %288 = tpu.matmul %287, %3, %cst_52 {dimension_numbers = #tpu.dot_dimension_numbers<[1], [0], [0], [1], [0, 0, 1, 1], [], []>} : vector<16x32xbf16>, vector<32x128xbf16>, vector<16x128xf32> -> vector<16x128xf32>
    %289 = vector.extract_strided_slice %286 {offsets = [0, 0], sizes = [16, 32], strides = [1, 1]} : vector<16x128xf32> to vector<16x32xf32>
    %290 = vector.extract_strided_slice %288 {offsets = [0, 0], sizes = [16, 32], strides = [1, 1]} : vector<16x128xf32> to vector<16x32xf32>
    %291 = arith.addf %289, %290 : vector<16x32xf32>
    %292 = arith.negf %291 : vector<16x32xf32>
    %293 = math.exp %292 : vector<16x32xf32>
    %cst_53 = arith.constant 1.000000e+00 : f32
    %294 = vector.broadcast %cst_53 : f32 to vector<16x32xf32>
    %295 = arith.addf %294, %293 : vector<16x32xf32>
    %296 = arith.divf %294, %295 : vector<16x32xf32>
    %297 = vector.extract_strided_slice %286 {offsets = [0, 32], sizes = [16, 32], strides = [1, 1]} : vector<16x128xf32> to vector<16x32xf32>
    %298 = vector.extract_strided_slice %288 {offsets = [0, 32], sizes = [16, 32], strides = [1, 1]} : vector<16x128xf32> to vector<16x32xf32>
    %299 = arith.addf %297, %298 : vector<16x32xf32>
    %300 = arith.negf %299 : vector<16x32xf32>
    %301 = math.exp %300 : vector<16x32xf32>
    %cst_54 = arith.constant 1.000000e+00 : f32
    %302 = vector.broadcast %cst_54 : f32 to vector<16x32xf32>
    %303 = arith.addf %302, %301 : vector<16x32xf32>
    %304 = arith.divf %302, %303 : vector<16x32xf32>
    %305 = vector.extract_strided_slice %286 {offsets = [0, 64], sizes = [16, 32], strides = [1, 1]} : vector<16x128xf32> to vector<16x32xf32>
    %306 = vector.extract_strided_slice %288 {offsets = [0, 64], sizes = [16, 32], strides = [1, 1]} : vector<16x128xf32> to vector<16x32xf32>
    %307 = arith.addf %306, %6 : vector<16x32xf32>
    %308 = arith.mulf %296, %307 : vector<16x32xf32>
    %309 = arith.addf %305, %308 : vector<16x32xf32>
    %310 = math.tanh %309 : vector<16x32xf32>
    %cst_55 = arith.constant 1.000000e+00 : f32
    %311 = vector.broadcast %cst_55 : f32 to vector<16x32xf32>
    %312 = arith.subf %311, %304 : vector<16x32xf32>
    %313 = arith.mulf %312, %310 : vector<16x32xf32>
    %314 = arith.mulf %304, %282 : vector<16x32xf32>
    %315 = arith.addf %313, %314 : vector<16x32xf32>
    %316 = arith.addi %8, %c7_i32 : i32
    %317 = vector.broadcast %316 : i32 to vector<16x1xi32>
    %318 = arith.cmpi slt, %317, %7 : vector<16x1xi32>
    %319 = vector.shape_cast %318 : vector<16x1xi1> to vector<16x1xi1>
    %320 = vector.broadcast %319 : vector<16x1xi1> to vector<16x32xi1>
    %321 = arith.select %320, %315, %282 : vector<16x32xi1>, vector<16x32xf32>
    %c8_i32_56 = arith.constant 8 : i32
    %c0_57 = arith.constant 0 : index
    %c0_58 = arith.constant 0 : index
    %322 = vector.load %arg9[%c0_57, %c0_58] : memref<16x32xf32, #tpu.memory_space<vmem>>, vector<16x32xf32>
    tpu.vector_store %arg9[%c0_57, %c0_58], %321 {strides = array<i32>} : memref<16x32xf32, #tpu.memory_space<vmem>>, vector<16x32xf32>,
    %c0_i32_59 = arith.constant 0 : i32
    %323 = arith.cmpi eq, %arg1, %c0_i32_59 : i32
    %324 = arith.extui %323 : i1 to i32
    %c0_i32_60 = arith.constant 0 : i32
    %325 = arith.cmpi ne, %324, %c0_i32_60 : i32
    scf.if %325 {
      %c0_61 = arith.constant 0 : index
      %c0_62 = arith.constant 0 : index
      %326 = vector.load %arg9[%c0_61, %c0_62] : memref<16x32xf32, #tpu.memory_space<vmem>>, vector<16x32xf32>
      %c0_63 = arith.constant 0 : index
      %c0_64 = arith.constant 0 : index
      %327 = vector.load %arg6[%c0_63, %c0_64] : memref<1x32xf32, #tpu.memory_space<vmem>>, vector<1x32xf32>
      %328 = vector.broadcast %327 : vector<1x32xf32> to vector<16x32xf32>
      %329 = arith.mulf %326, %328 : vector<16x32xf32>
      %cst_65 = arith.constant dense<0.000000e+00> : vector<16xf32>
      %330 = vector.multi_reduction <add>, %329, %cst_65 [1] : vector<16x32xf32> to vector<16xf32>
      %331 = vector.shape_cast %330 : vector<16xf32> to vector<16x1xf32>
      %c0_66 = arith.constant 0 : index
      %c0_67 = arith.constant 0 : index
      %332 = vector.load %arg7[%c0_66, %c0_67] : memref<1x1xf32, #tpu.memory_space<vmem>>, vector<1x1xf32>
      %333 = vector.broadcast %332 : vector<1x1xf32> to vector<16x1xf32>
      %334 = arith.addf %331, %333 : vector<16x1xf32>
      %335 = arith.negf %334 : vector<16x1xf32>
      %336 = math.exp %335 : vector<16x1xf32>
      %cst_68 = arith.constant 1.000000e+00 : f32
      %337 = vector.broadcast %cst_68 : f32 to vector<16x1xf32>
      %338 = arith.addf %337, %336 : vector<16x1xf32>
      %339 = arith.divf %337, %338 : vector<16x1xf32>
      %340 = vector.shape_cast %339 : vector<16x1xf32> to vector<16x1xf32>
      %341 = vector.broadcast %340 : vector<16x1xf32> to vector<16x128xf32>
      %c0_69 = arith.constant 0 : index
      %c0_70 = arith.constant 0 : index
      %342 = vector.load %arg8[%c0_69, %c0_70] : memref<16x128xf32, #tpu.memory_space<vmem>>, vector<16x128xf32>
      tpu.vector_store %arg8[%c0_69, %c0_70], %341 {strides = array<i32>} : memref<16x128xf32, #tpu.memory_space<vmem>>, vector<16x128xf32>,
    } else {
    }
    return
  }
  func.func @transform_0(%arg0: i32, %arg1: i32) -> (i32, i32, i32) {
    %c0_i32 = arith.constant 0 : i32
    %c0_i32_0 = arith.constant 0 : i32
    return %arg1, %arg0, %c0_i32 : i32, i32, i32
  }
  func.func @transform_1(%arg0: i32, %arg1: i32) -> (i32, i32) {
    %c0_i32 = arith.constant 0 : i32
    %c0_i32_0 = arith.constant 0 : i32
    return %arg0, %c0_i32 : i32, i32
  }
  func.func @transform_2(%arg0: i32, %arg1: i32) -> (i32, i32) {
    %c0_i32 = arith.constant 0 : i32
    %c0_i32_0 = arith.constant 0 : i32
    %c0_i32_1 = arith.constant 0 : i32
    return %c0_i32, %c0_i32_0 : i32, i32
  }
  func.func @transform_3(%arg0: i32, %arg1: i32) -> (i32, i32) {
    %c0_i32 = arith.constant 0 : i32
    %c0_i32_0 = arith.constant 0 : i32
    %c0_i32_1 = arith.constant 0 : i32
    return %c0_i32, %c0_i32_0 : i32, i32
  }
  func.func @transform_4(%arg0: i32, %arg1: i32) -> (i32, i32) {
    %c0_i32 = arith.constant 0 : i32
    %c0_i32_0 = arith.constant 0 : i32
    %c0_i32_1 = arith.constant 0 : i32
    return %c0_i32, %c0_i32_0 : i32, i32
  }
  func.func @transform_5(%arg0: i32, %arg1: i32) -> (i32, i32) {
    %c0_i32 = arith.constant 0 : i32
    %c0_i32_0 = arith.constant 0 : i32
    %c0_i32_1 = arith.constant 0 : i32
    return %c0_i32, %c0_i32_0 : i32, i32
  }
  func.func @transform_6(%arg0: i32, %arg1: i32) -> (i32, i32) {
    %c0_i32 = arith.constant 0 : i32
    %c0_i32_0 = arith.constant 0 : i32
    return %arg0, %c0_i32 : i32, i32
  }
}

</mosaic_0001>

<bundles_post_ra>
// kernel: tpu_custom_call.1
= control target key start
LH: loop header
LB: loop body
LE: loop exit
PB: predicated region body
PF: predicated region fallthrough
CT: control target
= control target key end

     0   :  { %s1829_s0 = inlined_call_operand.hbm [shape: bf16[8,16,128], index: 0, kind: input, shape index: {}]   ;;  %s1830_s1 = inlined_call_operand.vmem [shape: s32[16,1], index: 1, kind: input, shape index: {}]   ;;  %s1831_s2 = inlined_call_operand.vmem [shape: bf16[32,128], index: 2, kind: input, shape index: {}]   ;;  %s1832_s3 = inlined_call_operand.vmem [shape: f32[1,32], index: 3, kind: input, shape index: {}]   ;;  %s1833_s4 = inlined_call_operand.vmem [shape: f32[1,32], index: 4, kind: input, shape index: {}]   ;;  %s1834_s5 = inlined_call_operand.<no memory space> [shape: f32[1,1], index: 5, kind: input, shape index: {}]   ;;  %s1835_s6 = inlined_call_operand.hbm [shape: f32[16,128], index: 6, kind: output, shape index: {}]  }
   0x1   :  { %v11_v0 = vstv %s1834_s5 }
   0x2   :  { %12 = vst [vmem:[#allocation3] sm:$0x1] %v11_v0 }
   0x3   :  { %13 = vsyncpa [#allocation5], 0 }
   0x4   :  { %14 = vsyncpa [#allocation6], 0  ;;  %s1480_s23 = smov [#allocation4]   ;;  %s1432_s27 = scalar_lea.hbm %s1829_s0, 1024 }
   0x5   :  { %s20_s24 = sshll.u32 %s1480_s23, 4  ;;  %p1433_p0 = scmp.ne.s32.totalorder %s1829_s0, %s1432_s27  ;;  %s21_s24 = int_to_ptr.vmem [resolvable:$true] %s20_s24 }
   0x6   :  { %p1436_p1 = scmp.lt.u32.totalorder %s1432_s27, %s1829_s0 }
   0x8   :  { %p1438_p2 = pnand %p1436_p1, %p1433_p0 }
   0xa   :  { %1441 = shalt.err (!%p1438_p2)
}
   0xb   :  { %s1442_s5 = scalar_lea.vmem %s21_s24, 1024  ;;  %p1447_p4 = scmp.lt.s32.totalorder %s21_s24, %s21_s24 }
   0xc   :  { %p1443_p3 = scmp.ne.s32.totalorder %s21_s24, %s1442_s5  ;;  %p1448_p5 = scmp.lt.s32.totalorder %s1442_s5, %s1442_s5 }
   0xe   :  { %p1449_p6 = por %p1448_p5, %p1447_p4 }
  0x10   :  { %p1450_p7 = pnand %p1449_p6, %p1443_p3 }
  0x12   :  { %1453 = shalt.err (!%p1450_p7)
}
  0x13   :  { %s1481_s8 = smov 64   ;;  %s1482_s9 = smov 4  }
  0x14   :  { %26 = dma.hbm_to_vmem [thread:$0]  %s1829_s0, 1024, %s21_s24, [#allocation5], %s1481_s8, %s1481_s8, %s1482_s9  }
  0x15   :  { %1476 = dma.done.wait [#allocation5], 1024  }
  0x16   :  { %1477 = vsyncadd [#allocation5], 4294966272  ;;  %vm45_vm0 = vcmask 261120   ;;  %v1483_v1 = vmov 0.0   ;;  %vm1484_vm1 = vmmov 0   ;;  %v1556_v2 = vld [vmem:[%s1831_s2] sm:$0xff]  }
  0x17   :  { %1249 = vmatprep.subr.bf16.mxu0 %v1483_v1  ;;  %1253 = vmatprep.mubr.msk.bf16.mxu0 %vm1484_vm1, %v1483_v1  ;;  %46 = vst.msk [vmem:[#allocation2] sm:$0xff] %vm45_vm0, %v1483_v1  ;;  %47 = vst.msk [vmem:[#allocation2 + $0x8] sm:$0xff] %vm45_vm0, %v1483_v1  ;;  %v1561_v3 = vld [vmem:[%s1831_s2 + $0x8] sm:$0xff]   ;;  %v1146_v6 = vld [vmem:[%s1832_s3] ss:$0 sm:$0xff]  ;;  %v1485_v8 = vmov 0  }
  0x18   :  { %1257 = vmatprep.subr.bf16.mxu1 %v1483_v1  ;;  %1261 = vmatprep.mubr.msk.bf16.mxu1 %vm1484_vm1, %v1483_v1  ;;  %v1194_v16 = vld [vmem:[#allocation4] sm:$0xff]   ;;  %v1596_v27 = vld [vmem:[%s1830_s1] sm:$0xff]  ;;  %v1601_v30 = vld [vmem:[%s1830_s1 + $0x8] sm:$0xff]  ;;  %s1486_s1 = smov 32   ;;  %s1487_s19 = smov 96  }
  0x19   :  { %1250 = vmatpush3.bf16.msra.mxu0 %v1556_v2  ;;  %1258 = vmatpush3.bf16.msra.mxu1 %v1556_v2  ;;  %v1195_v17 = vunpack.c.l.bf16 %v1194_v16  ;;  %v1196_v18 = vunpack.c.h.bf16 %v1194_v16  ;;  %vm1152_vm2 = vcmp.gt.s32.totalorder %v1596_v27, 0  ;;  %vm1153_vm3 = vcmp.gt.s32.totalorder %v1601_v30, 0 }
  0x1a   :  { %1251 = vmatprep.subr.bf16.mxu0 %v1483_v1  ;;  %139 = vrot.lane.b32.xlu0 %v1146_v6, %s1481_s8  ;;  %v193_v35 = vsel %vm1152_vm2, 1, %v1485_v8  ;;  %v194_v36 = vsel %vm1153_vm3, 1, %v1485_v8  ;;  %v1198_v6 = vld [vmem:[#allocation4 + $0x8] sm:$0xff]   ;;  %vm1157_vm6 = vcmp.gt.s32.totalorder %v1596_v27, 1  ;;  %vm1158_vm7 = vcmp.gt.s32.totalorder %v1601_v30, 1 }
  0x1b   :  { %1259 = vmatprep.subr.bf16.mxu1 %v1483_v1  ;;  %1325 = vset.pattern.permute.xlu0 %v1485_v8  ;;  %vm1162_vm10 = vcmp.gt.s32.totalorder %v1596_v27, 2  ;;  %vm1163_vm11 = vcmp.gt.s32.totalorder %v1601_v30, 2  ;;  %vm1167_vm14 = vcmp.gt.s32.totalorder %v1596_v27, 3  ;;  %vm1168_vm15 = vcmp.gt.s32.totalorder %v1601_v30, 3 }
  0x1c   :  { %1324 = vset.pattern.permute.xlu1 %v1485_v8 }
  0x1d   :  { %1252 = vmatpush3.bf16.msra.mxu0 %v1561_v3  ;;  %1260 = vmatpush3.bf16.msra.mxu1 %v1561_v3 }
  0x1e   :  { %v61_v4 = vld [vmem:[#allocation2] sm:$0xff]  ;;  %v1564_v5 = vld [vmem:[#allocation2 + $0x8] sm:$0xff]  ;;  %1265 = vmatprep.subr.bf16.mxu0 %v1483_v1  ;;  %1273 = vmatprep.subr.bf16.mxu1 %v1483_v1 }
  0x1f   :  { %v67_v7 = vpack.c.bf16 %v1564_v5, %v61_v4 }
  0x21   :  { %1254 = vmatmul.mubr.msk.bf16.vlgmr.msra.gmra.mrb[0].mxu0 %vm45_vm0, %v67_v7  ;;  %v1199_v7 = vunpack.c.l.bf16 %v1198_v6 }
  0x22   :  { %1266 = vmatpush3.bf16.msra.mxu0 %v1556_v2  ;;  %1269 = vmatprep.mubr.msk.bf16.mxu0 %vm1484_vm1, %v1483_v1 }
  0x23   :  { %1267 = vmatprep.subr.bf16.mxu0 %v1483_v1 }
  0x26   :  { %1268 = vmatpush3.bf16.msra.mxu0 %v1561_v3 }
  0x27   :  { %1281 = vmatprep.subr.bf16.mxu0 %v1483_v1 }
  0x8c   :  { %v1587_v9 = vpop.permute.xlu0 %139 }
  0xf4   :  { %v118_v10 = vpop.f32.mrb[0].mxu0 }
  0xf5   :  { %v1255_v11 = vpop.f32.mrb[1].mxu0  ;;  %v142_v12 = vadd.f32 %v1587_v9, %v118_v10  ;;  %v125_v19 = vadd.f32 %v1195_v17, %v118_v10  ;;  %v1200_v10 = vunpack.c.h.bf16 %v1198_v6 }
  0xf6   :  { %v121_v13 = vpop.f32.mrb[2].mxu0 }
  0xf7   :  { %146 = vrot.lane.b32.xlu0 %v142_v12, %s1481_s8  ;;  %v1256_v14 = vpop.f32.mrb[3].mxu0  ;;  %v143_v15 = vadd.f32 %v1587_v9, %v121_v13  ;;  %v126_v20 = vadd.f32 %v1196_v18, %v121_v13  ;;  %v1150_v21 = vmul.f32 -1.442695, %v125_v19 }
  0xf9   :  { %148 = vrot.lane.b32.xlu1 %v143_v15, %s1481_s8  ;;  %v1151_v22 = vmul.f32 -1.442695, %v126_v20  ;;  %1328 = vpow2.f32 %v1150_v21 }
  0xfb   :  { %1330 = vpow2.f32 %v1151_v22 }
 0x103   :  { %v1329_v23 = vpop.eup %1328 }
 0x104   :  { %v133_v25 = vadd.f32 1.0, %v1329_v23 }
 0x105   :  { %v1331_v24 = vpop.eup %1330 }
 0x106   :  { %v134_v26 = vadd.f32 1.0, %v1331_v24  ;;  %1332 = vrcp.f32 %v133_v25  ;;  %v316_v25 = vsel %vm1157_vm6, 1, %v1485_v8 }
 0x108   :  { %1334 = vrcp.f32 %v134_v26  ;;  %v317_v26 = vsel %vm1158_vm7, 1, %v1485_v8 }
 0x110   :  { %v1333_v28 = vpop.eup %1332 }
 0x111   :  { %v166_v46 = vsub.f32 1.0, %v1333_v28 }
 0x112   :  { %v1335_v32 = vpop.eup %1334 }
 0x113   :  { %v167_v51 = vsub.f32 1.0, %v1335_v32 }
 0x169   :  { %v147_v29 = vpop.permute.xlu0 %146 }
 0x16a   :  { %v152_v31 = vmul.f32 %v1333_v28, %v147_v29 }
 0x16b   :  { %v149_v33 = vpop.permute.xlu1 %148 }
 0x16c   :  { %v153_v34 = vmul.f32 %v1335_v32, %v149_v33  ;;  %156 = vrot.lane.b32.xlu1 %v152_v31, %s1481_s8 }
 0x16e   :  { %158 = vrot.lane.b32.xlu0 %v153_v34, %s1481_s8 }
 0x170   :  { %196 = vperm.xlu1 %1324, %v193_v35  }
 0x172   :  { %199 = vperm.xlu0 %1325, %v194_v36  }
 0x176   :  { %180 = vrot.lane.b32.xlu0 %v61_v4, %s1486_s1 }
 0x1de   :  { %v157_v37 = vpop.permute.xlu1 %156 }
 0x1df   :  { %v162_v38 = vadd.f32 %v1195_v17, %v157_v37 }
 0x1e0   :  { %v159_v39 = vpop.permute.xlu0 %158 }
 0x1e1   :  { %1336 = vtanh.f32 %v162_v38  ;;  %v163_v40 = vadd.f32 %v1196_v18, %v159_v39 }
 0x1e3   :  { %1338 = vtanh.f32 %v163_v40 }
 0x1eb   :  { %v1337_v41 = vpop.eup %1336 }
 0x1ec   :  { %170 = vrot.lane.b32.xlu1 %v1337_v41, %s1487_s19 }
 0x1ed   :  { %v1339_v42 = vpop.eup %1338 }
 0x1ef   :  { %v197_v43 = vpop.permute.xlu1 %196 }
 0x1f0   :  { %172 = vrot.lane.b32.xlu1 %v1339_v42, %s1487_s19  ;;  %vm201_vm5 = vcmp.eq.s32.totalorder %v197_v43, 1 }
 0x1f1   :  { %v200_v44 = vpop.permute.xlu0 %199 }
 0x1f2   :  { %vm202_vm4 = vcmp.eq.s32.totalorder %v200_v44, 1 }
 0x1f4   :  { %182 = vrot.lane.b32.xlu1 %v1564_v5, %s1486_s1 }
 0x1f5   :  { %v181_v47 = vpop.permute.xlu0 %180 }
 0x1f6   :  { %v186_v50 = vmul.f32 %v1333_v28, %v181_v47 }
 0x25e   :  { %v171_v45 = vpop.permute.xlu1 %170 }
 0x25f   :  { %v176_v49 = vmul.f32 %v171_v45, %v166_v46 }
 0x261   :  { %v188_v53 = vadd.f32 %v186_v50, %v176_v49 }
 0x262   :  { %v173_v48 = vpop.permute.xlu1 %172 }
 0x263   :  { %v177_v54 = vmul.f32 %v173_v48, %v167_v51  ;;  %v1614_v58 = vsel %vm201_vm5, %v188_v53, %v181_v47  ;;  %vm1173_vm5 = vcmp.gt.s32.totalorder %v1601_v30, 4 }
 0x266   :  { %v183_v52 = vpop.permute.xlu1 %182 }
 0x267   :  { %v187_v55 = vmul.f32 %v1335_v32, %v183_v52 }
 0x269   :  { %v189_v56 = vadd.f32 %v187_v55, %v177_v54 }
 0x26b   :  { %v1612_v57 = vsel %vm202_vm4, %v189_v56, %v183_v52  ;;  %vm1172_vm4 = vcmp.gt.s32.totalorder %v1596_v27, 4 }
 0x26c   :  { %v210_v59 = vpack.c.bf16 %v1612_v57, %v1614_v58 }
 0x26e   :  { %212 = vrot.lane.b32.xlu0 %v210_v59, %s1487_s19 }
 0x2e0   :  { %v213_v60 = vpop.permute.xlu0 %212 }
 0x2e1   :  { %1262 = vmatmul.mubr.msk.bf16.vlgmr.msra.gmra.mrb[0].mxu1 %vm45_vm0, %v213_v60 }
 0x2e2   :  { %1274 = vmatpush3.bf16.msra.mxu1 %v1556_v2  ;;  %1277 = vmatprep.mubr.msk.bf16.mxu1 %vm1484_vm1, %v1483_v1 }
 0x2e3   :  { %1275 = vmatprep.subr.bf16.mxu1 %v1483_v1 }
 0x2e6   :  { %1276 = vmatpush3.bf16.msra.mxu1 %v1561_v3 }
 0x2e7   :  { %1289 = vmatprep.subr.bf16.mxu1 %v1483_v1 }
 0x3b4   :  { %v251_v61 = vpop.f32.mrb[0].mxu1 }
 0x3b5   :  { %v1263_v62 = vpop.f32.mrb[1].mxu1  ;;  %v272_v63 = vadd.f32 %v251_v61, %v1587_v9  ;;  %v258_v11 = vadd.f32 %v1199_v7, %v251_v61 }
 0x3b6   :  { %v254_v0 = vpop.f32.mrb[2].mxu1 }
 0x3b7   :  { %276 = vrot.lane.b32.xlu1 %v272_v63, %s1481_s8  ;;  %v1264_v4 = vpop.f32.mrb[3].mxu1  ;;  %v273_v5 = vadd.f32 %v254_v0, %v1587_v9  ;;  %v259_v12 = vadd.f32 %v1200_v10, %v254_v0  ;;  %v1155_v13 = vmul.f32 -1.442695, %v258_v11 }
 0x3b9   :  { %278 = vrot.lane.b32.xlu0 %v273_v5, %s1481_s8  ;;  %v1156_v14 = vmul.f32 -1.442695, %v259_v12  ;;  %1340 = vpow2.f32 %v1155_v13 }
 0x3bb   :  { %1342 = vpow2.f32 %v1156_v14 }
 0x3c3   :  { %v1341_v15 = vpop.eup %1340 }
 0x3c4   :  { %v266_v17 = vadd.f32 1.0, %v1341_v15  ;;  %v439_v15 = vsel %vm1162_vm10, 1, %v1485_v8 }
 0x3c5   :  { %v1343_v16 = vpop.eup %1342 }
 0x3c6   :  { %v267_v18 = vadd.f32 1.0, %v1343_v16  ;;  %1344 = vrcp.f32 %v266_v17  ;;  %v440_v16 = vsel %vm1163_vm11, 1, %v1485_v8  ;;  %vm1182_vm11 = vcmp.gt.s32.totalorder %v1596_v27, 6 }
 0x3c8   :  { %1346 = vrcp.f32 %v267_v18 }
 0x3d0   :  { %v1345_v19 = vpop.eup %1344 }
 0x3d1   :  { %v296_v37 = vsub.f32 1.0, %v1345_v19  ;;  %v308_v39 = vmul.f32 %v1345_v19, %v1614_v58 }
 0x3d2   :  { %v1347_v22 = vpop.eup %1346 }
 0x3d3   :  { %v297_v41 = vsub.f32 1.0, %v1347_v22  ;;  %v309_v44 = vmul.f32 %v1347_v22, %v1612_v57 }
 0x429   :  { %v277_v20 = vpop.permute.xlu1 %276 }
 0x42a   :  { %v282_v21 = vmul.f32 %v1345_v19, %v277_v20 }
 0x42b   :  { %v279_v23 = vpop.permute.xlu0 %278 }
 0x42c   :  { %v283_v24 = vmul.f32 %v1347_v22, %v279_v23  ;;  %286 = vrot.lane.b32.xlu1 %v282_v21, %s1481_s8 }
 0x42e   :  { %288 = vrot.lane.b32.xlu0 %v283_v24, %s1481_s8 }
 0x430   :  { %319 = vperm.xlu1 %1324, %v316_v25  }
 0x432   :  { %322 = vperm.xlu0 %1325, %v317_v26  }
 0x49e   :  { %v287_v28 = vpop.permute.xlu1 %286 }
 0x49f   :  { %v292_v29 = vadd.f32 %v1199_v7, %v287_v28 }
 0x4a0   :  { %v289_v31 = vpop.permute.xlu0 %288 }
 0x4a1   :  { %1348 = vtanh.f32 %v292_v29  ;;  %v293_v32 = vadd.f32 %v1200_v10, %v289_v31 }
 0x4a3   :  { %1350 = vtanh.f32 %v293_v32 }
 0x4ab   :  { %v1349_v33 = vpop.eup %1348 }
 0x4ac   :  { %300 = vrot.lane.b32.xlu1 %v1349_v33, %s1487_s19 }
 0x4ad   :  { %v1351_v34 = vpop.eup %1350 }
 0x4ae   :  { %302 = vrot.lane.b32.xlu0 %v1351_v34, %s1487_s19 }
 0x4af   :  { %v320_v35 = vpop.permute.xlu1 %319 }
 0x4b0   :  { %vm324_vm8 = vcmp.eq.s32.totalorder %v320_v35, 1 }
 0x4b1   :  { %v323_v36 = vpop.permute.xlu0 %322 }
 0x4b2   :  { %vm325_vm9 = vcmp.eq.s32.totalorder %v323_v36, 1 }
 0x51e   :  { %v301_v38 = vpop.permute.xlu1 %300 }
 0x51f   :  { %v306_v40 = vmul.f32 %v301_v38, %v296_v37 }
 0x520   :  { %v303_v42 = vpop.permute.xlu0 %302 }
 0x521   :  { %v310_v43 = vadd.f32 %v308_v39, %v306_v40  ;;  %v307_v45 = vmul.f32 %v303_v42, %v297_v41 }
 0x523   :  { %v311_v46 = vadd.f32 %v309_v44, %v307_v45  ;;  %v1641_v47 = vsel %vm324_vm8, %v310_v43, %v1614_v58  ;;  %vm1178_vm8 = vcmp.gt.s32.totalorder %v1601_v30, 5 }
 0x525   :  { %v1644_v48 = vsel %vm325_vm9, %v311_v46, %v1612_v57  ;;  %v1202_v57 = vld [vmem:[#allocation4 + $0x10] sm:$0xff]  }
 0x526   :  { %v333_v49 = vpack.c.bf16 %v1644_v48, %v1641_v47  ;;  %v1203_v58 = vunpack.c.l.bf16 %v1202_v57  ;;  %v1204_v59 = vunpack.c.h.bf16 %v1202_v57 }
 0x528   :  { %335 = vrot.lane.b32.xlu1 %v333_v49, %s1487_s19 }
 0x59a   :  { %v336_v50 = vpop.permute.xlu1 %335 }
 0x59b   :  { %1270 = vmatmul.mubr.msk.bf16.vlgmr.msra.gmra.mrb[4].mxu0 %vm45_vm0, %v336_v50 }
 0x59c   :  { %1282 = vmatpush3.bf16.msra.mxu0 %v1556_v2  ;;  %1285 = vmatprep.mubr.msk.bf16.mxu0 %vm1484_vm1, %v1483_v1 }
 0x59d   :  { %1283 = vmatprep.subr.bf16.mxu0 %v1483_v1 }
 0x5a0   :  { %1284 = vmatpush3.bf16.msra.mxu0 %v1561_v3 }
 0x5a1   :  { %1297 = vmatprep.subr.bf16.mxu0 %v1483_v1 }
 0x66e   :  { %v374_v51 = vpop.f32.mrb[4].mxu0 }
 0x66f   :  { %v1271_v52 = vpop.f32.mrb[5].mxu0  ;;  %v395_v53 = vadd.f32 %v374_v51, %v1587_v9  ;;  %v381_v60 = vadd.f32 %v1203_v58, %v374_v51 }
 0x670   :  { %v377_v54 = vpop.f32.mrb[6].mxu0 }
 0x671   :  { %399 = vrot.lane.b32.xlu0 %v395_v53, %s1481_s8  ;;  %v1272_v55 = vpop.f32.mrb[7].mxu0  ;;  %v396_v56 = vadd.f32 %v377_v54, %v1587_v9  ;;  %v382_v61 = vadd.f32 %v1204_v59, %v377_v54  ;;  %v1160_v62 = vmul.f32 -1.442695, %v381_v60 }
 0x673   :  { %401 = vrot.lane.b32.xlu1 %v396_v56, %s1481_s8  ;;  %v1161_v63 = vmul.f32 -1.442695, %v382_v61  ;;  %1352 = vpow2.f32 %v1160_v62 }
 0x675   :  { %1354 = vpow2.f32 %v1161_v63 }
 0x67d   :  { %v1353_v0 = vpop.eup %1352 }
 0x67e   :  { %v389_v5 = vadd.f32 1.0, %v1353_v0  ;;  %v562_v0 = vsel %vm1167_vm14, 1, %v1485_v8 }
 0x67f   :  { %v1355_v4 = vpop.eup %1354 }
 0x680   :  { %v390_v6 = vadd.f32 1.0, %v1355_v4  ;;  %1356 = vrcp.f32 %v389_v5  ;;  %v563_v4 = vsel %vm1168_vm15, 1, %v1485_v8  ;;  %vm1187_vm15 = vcmp.gt.s32.totalorder %v1596_v27, 7 }
 0x682   :  { %1358 = vrcp.f32 %v390_v6 }
 0x68a   :  { %v1357_v7 = vpop.eup %1356 }
 0x68b   :  { %v419_v25 = vsub.f32 1.0, %v1357_v7  ;;  %v431_v28 = vmul.f32 %v1357_v7, %v1641_v47 }
 0x68c   :  { %v1359_v12 = vpop.eup %1358 }
 0x68d   :  { %v420_v31 = vsub.f32 1.0, %v1359_v12  ;;  %v432_v34 = vmul.f32 %v1359_v12, %v1644_v48 }
 0x6e3   :  { %v400_v10 = vpop.permute.xlu0 %399 }
 0x6e4   :  { %v405_v11 = vmul.f32 %v1357_v7, %v400_v10 }
 0x6e5   :  { %v402_v13 = vpop.permute.xlu1 %401 }
 0x6e6   :  { %v406_v14 = vmul.f32 %v1359_v12, %v402_v13  ;;  %409 = vrot.lane.b32.xlu0 %v405_v11, %s1481_s8 }
 0x6e8   :  { %411 = vrot.lane.b32.xlu1 %v406_v14, %s1481_s8 }
 0x6ea   :  { %442 = vperm.xlu0 %1325, %v439_v15  }
 0x6ec   :  { %445 = vperm.xlu1 %1324, %v440_v16  }
 0x758   :  { %v410_v17 = vpop.permute.xlu0 %409 }
 0x759   :  { %v415_v18 = vadd.f32 %v1203_v58, %v410_v17 }
 0x75a   :  { %v412_v19 = vpop.permute.xlu1 %411 }
 0x75b   :  { %1360 = vtanh.f32 %v415_v18  ;;  %v416_v20 = vadd.f32 %v1204_v59, %v412_v19 }
 0x75d   :  { %1362 = vtanh.f32 %v416_v20 }
 0x765   :  { %v1361_v21 = vpop.eup %1360 }
 0x766   :  { %423 = vrot.lane.b32.xlu0 %v1361_v21, %s1487_s19 }
 0x767   :  { %v1363_v22 = vpop.eup %1362 }
 0x768   :  { %425 = vrot.lane.b32.xlu1 %v1363_v22, %s1487_s19 }
 0x769   :  { %v443_v23 = vpop.permute.xlu0 %442 }
 0x76a   :  { %vm447_vm12 = vcmp.eq.s32.totalorder %v443_v23, 1 }
 0x76b   :  { %v446_v24 = vpop.permute.xlu1 %445 }
 0x76c   :  { %vm448_vm13 = vcmp.eq.s32.totalorder %v446_v24, 1 }
 0x7d8   :  { %v424_v26 = vpop.permute.xlu0 %423 }
 0x7d9   :  { %v429_v29 = vmul.f32 %v424_v26, %v419_v25 }
 0x7da   :  { %v426_v32 = vpop.permute.xlu1 %425 }
 0x7db   :  { %v433_v33 = vadd.f32 %v431_v28, %v429_v29  ;;  %v430_v35 = vmul.f32 %v426_v32, %v420_v31 }
 0x7dd   :  { %v434_v36 = vadd.f32 %v432_v34, %v430_v35  ;;  %v1671_v37 = vsel %vm447_vm12, %v433_v33, %v1641_v47  ;;  %v1206_v47 = vld [vmem:[#allocation4 + $0x18] sm:$0xff]   ;;  %vm1183_vm12 = vcmp.gt.s32.totalorder %v1601_v30, 6 }
 0x7de   :  { %v1208_v49 = vunpack.c.h.bf16 %v1206_v47 }
 0x7df   :  { %v1674_v38 = vsel %vm448_vm13, %v434_v36, %v1644_v48  ;;  %v1207_v48 = vunpack.c.l.bf16 %v1206_v47 }
 0x7e0   :  { %v456_v39 = vpack.c.bf16 %v1674_v38, %v1671_v37 }
 0x7e2   :  { %458 = vrot.lane.b32.xlu0 %v456_v39, %s1487_s19 }
 0x854   :  { %v459_v40 = vpop.permute.xlu0 %458 }
 0x855   :  { %1278 = vmatmul.mubr.msk.bf16.vlgmr.msra.gmra.mrb[4].mxu1 %vm45_vm0, %v459_v40 }
 0x856   :  { %1290 = vmatpush3.bf16.msra.mxu1 %v1556_v2  ;;  %1293 = vmatprep.mubr.msk.bf16.mxu1 %vm1484_vm1, %v1483_v1 }
 0x857   :  { %1291 = vmatprep.subr.bf16.mxu1 %v1483_v1 }
 0x85a   :  { %1292 = vmatpush3.bf16.msra.mxu1 %v1561_v3 }
 0x85b   :  { %1305 = vmatprep.subr.bf16.mxu1 %v1483_v1 }
 0x928   :  { %v497_v41 = vpop.f32.mrb[4].mxu1 }
 0x929   :  { %v1279_v42 = vpop.f32.mrb[5].mxu1  ;;  %v518_v43 = vadd.f32 %v497_v41, %v1587_v9  ;;  %v504_v50 = vadd.f32 %v1207_v48, %v497_v41 }
 0x92a   :  { %v500_v44 = vpop.f32.mrb[6].mxu1 }
 0x92b   :  { %522 = vrot.lane.b32.xlu1 %v518_v43, %s1481_s8  ;;  %v1280_v45 = vpop.f32.mrb[7].mxu1  ;;  %v519_v46 = vadd.f32 %v500_v44, %v1587_v9  ;;  %v505_v51 = vadd.f32 %v1208_v49, %v500_v44  ;;  %v1165_v52 = vmul.f32 -1.442695, %v504_v50 }
 0x92d   :  { %524 = vrot.lane.b32.xlu0 %v519_v46, %s1481_s8  ;;  %v1166_v53 = vmul.f32 -1.442695, %v505_v51  ;;  %1364 = vpow2.f32 %v1165_v52 }
 0x92f   :  { %1366 = vpow2.f32 %v1166_v53 }
 0x937   :  { %v1365_v54 = vpop.eup %1364 }
 0x938   :  { %v512_v56 = vadd.f32 1.0, %v1365_v54  ;;  %v685_v54 = vsel %vm1172_vm4, 1, %v1485_v8 }
 0x939   :  { %v1367_v55 = vpop.eup %1366 }
 0x93a   :  { %v513_v57 = vadd.f32 1.0, %v1367_v55  ;;  %1368 = vrcp.f32 %v512_v56  ;;  %v686_v55 = vsel %vm1173_vm5, 1, %v1485_v8 }
 0x93c   :  { %1370 = vrcp.f32 %v513_v57 }
 0x944   :  { %v1369_v58 = vpop.eup %1368 }
 0x945   :  { %v542_v15 = vsub.f32 1.0, %v1369_v58  ;;  %v554_v17 = vmul.f32 %v1369_v58, %v1671_v37 }
 0x946   :  { %v1371_v61 = vpop.eup %1370 }
 0x947   :  { %v543_v19 = vsub.f32 1.0, %v1371_v61  ;;  %v555_v22 = vmul.f32 %v1371_v61, %v1674_v38 }
 0x99d   :  { %v523_v59 = vpop.permute.xlu1 %522 }
 0x99e   :  { %v528_v60 = vmul.f32 %v1369_v58, %v523_v59 }
 0x99f   :  { %v525_v62 = vpop.permute.xlu0 %524 }
 0x9a0   :  { %v529_v63 = vmul.f32 %v1371_v61, %v525_v62  ;;  %532 = vrot.lane.b32.xlu1 %v528_v60, %s1481_s8 }
 0x9a2   :  { %534 = vrot.lane.b32.xlu0 %v529_v63, %s1481_s8 }
 0x9a4   :  { %565 = vperm.xlu1 %1324, %v562_v0  }
 0x9a6   :  { %568 = vperm.xlu0 %1325, %v563_v4  }
 0xa12   :  { %v533_v5 = vpop.permute.xlu1 %532 }
 0xa13   :  { %v538_v6 = vadd.f32 %v1207_v48, %v533_v5 }
 0xa14   :  { %v535_v7 = vpop.permute.xlu0 %534 }
 0xa15   :  { %1372 = vtanh.f32 %v538_v6  ;;  %v539_v10 = vadd.f32 %v1208_v49, %v535_v7 }
 0xa17   :  { %1374 = vtanh.f32 %v539_v10 }
 0xa1f   :  { %v1373_v11 = vpop.eup %1372 }
 0xa20   :  { %546 = vrot.lane.b32.xlu1 %v1373_v11, %s1487_s19 }
 0xa21   :  { %v1375_v12 = vpop.eup %1374 }
 0xa22   :  { %548 = vrot.lane.b32.xlu0 %v1375_v12, %s1487_s19 }
 0xa23   :  { %v566_v13 = vpop.permute.xlu1 %565 }
 0xa24   :  { %vm570_vm2 = vcmp.eq.s32.totalorder %v566_v13, 1 }
 0xa25   :  { %v569_v14 = vpop.permute.xlu0 %568 }
 0xa26   :  { %vm571_vm3 = vcmp.eq.s32.totalorder %v569_v14, 1 }
 0xa92   :  { %v547_v16 = vpop.permute.xlu1 %546 }
 0xa93   :  { %v552_v18 = vmul.f32 %v547_v16, %v542_v15 }
 0xa94   :  { %v549_v20 = vpop.permute.xlu0 %548 }
 0xa95   :  { %v556_v21 = vadd.f32 %v554_v17, %v552_v18  ;;  %v553_v23 = vmul.f32 %v549_v20, %v543_v19 }
 0xa97   :  { %v557_v24 = vadd.f32 %v555_v22, %v553_v23  ;;  %v1701_v25 = vsel %vm570_vm2, %v556_v21, %v1671_v37  ;;  %v1210_v37 = vld [vmem:[#allocation4 + $0x20] sm:$0xff]   ;;  %vm1188_vm2 = vcmp.gt.s32.totalorder %v1601_v30, 7 }
 0xa98   :  { %v1212_v39 = vunpack.c.h.bf16 %v1210_v37 }
 0xa99   :  { %v1704_v26 = vsel %vm571_vm3, %v557_v24, %v1674_v38  ;;  %v1211_v38 = vunpack.c.l.bf16 %v1210_v37 }
 0xa9a   :  { %v579_v28 = vpack.c.bf16 %v1704_v26, %v1701_v25 }
 0xa9c   :  { %581 = vrot.lane.b32.xlu1 %v579_v28, %s1487_s19 }
 0xb0e   :  { %v582_v29 = vpop.permute.xlu1 %581 }
 0xb0f   :  { %1286 = vmatmul.mubr.msk.bf16.vlgmr.msra.gmra.mrb[8].mxu0 %vm45_vm0, %v582_v29 }
 0xb10   :  { %1298 = vmatpush3.bf16.msra.mxu0 %v1556_v2  ;;  %1301 = vmatprep.mubr.msk.bf16.mxu0 %vm1484_vm1, %v1483_v1 }
 0xb11   :  { %1299 = vmatprep.subr.bf16.mxu0 %v1483_v1 }
 0xb14   :  { %1300 = vmatpush3.bf16.msra.mxu0 %v1561_v3 }
 0xbe2   :  { %v620_v31 = vpop.f32.mrb[8].mxu0 }
 0xbe3   :  { %v1287_v32 = vpop.f32.mrb[9].mxu0  ;;  %v641_v33 = vadd.f32 %v620_v31, %v1587_v9  ;;  %v627_v40 = vadd.f32 %v1211_v38, %v620_v31 }
 0xbe4   :  { %v623_v34 = vpop.f32.mrb[10].mxu0 }
 0xbe5   :  { %645 = vrot.lane.b32.xlu0 %v641_v33, %s1481_s8  ;;  %v1288_v35 = vpop.f32.mrb[11].mxu0  ;;  %v642_v36 = vadd.f32 %v623_v34, %v1587_v9  ;;  %v628_v41 = vadd.f32 %v1212_v39, %v623_v34  ;;  %v1170_v42 = vmul.f32 -1.442695, %v627_v40 }
 0xbe7   :  { %647 = vrot.lane.b32.xlu1 %v642_v36, %s1481_s8  ;;  %v1171_v43 = vmul.f32 -1.442695, %v628_v41  ;;  %1376 = vpow2.f32 %v1170_v42  ;;  %v809_v42 = vsel %vm1178_vm8, 1, %v1485_v8 }
 0xbe9   :  { %1378 = vpow2.f32 %v1171_v43 }
 0xbf1   :  { %v1377_v44 = vpop.eup %1376 }
 0xbf2   :  { %v635_v46 = vadd.f32 1.0, %v1377_v44 }
 0xbf3   :  { %v1379_v45 = vpop.eup %1378 }
 0xbf4   :  { %v636_v47 = vadd.f32 1.0, %v1379_v45  ;;  %1380 = vrcp.f32 %v635_v46 }
 0xbf6   :  { %1382 = vrcp.f32 %v636_v47 }
 0xbfe   :  { %v1381_v48 = vpop.eup %1380 }
 0xbff   :  { %v665_v0 = vsub.f32 1.0, %v1381_v48  ;;  %v677_v5 = vmul.f32 %v1381_v48, %v1701_v25 }
 0xc00   :  { %v1383_v51 = vpop.eup %1382 }
 0xc01   :  { %v666_v7 = vsub.f32 1.0, %v1383_v51  ;;  %v678_v12 = vmul.f32 %v1383_v51, %v1704_v26 }
 0xc57   :  { %v646_v49 = vpop.permute.xlu0 %645 }
 0xc58   :  { %v651_v50 = vmul.f32 %v1381_v48, %v646_v49 }
 0xc59   :  { %v648_v52 = vpop.permute.xlu1 %647 }
 0xc5a   :  { %v652_v53 = vmul.f32 %v1383_v51, %v648_v52  ;;  %655 = vrot.lane.b32.xlu0 %v651_v50, %s1481_s8 }
 0xc5c   :  { %657 = vrot.lane.b32.xlu1 %v652_v53, %s1481_s8 }
 0xc5e   :  { %688 = vperm.xlu0 %1325, %v685_v54  }
 0xc60   :  { %691 = vperm.xlu1 %1324, %v686_v55  }
 0xccc   :  { %v656_v56 = vpop.permute.xlu0 %655 }
 0xccd   :  { %v661_v57 = vadd.f32 %v1211_v38, %v656_v56 }
 0xcce   :  { %v658_v58 = vpop.permute.xlu1 %657 }
 0xccf   :  { %1384 = vtanh.f32 %v661_v57  ;;  %v662_v59 = vadd.f32 %v1212_v39, %v658_v58 }
 0xcd1   :  { %1386 = vtanh.f32 %v662_v59 }
 0xcd9   :  { %v1385_v60 = vpop.eup %1384 }
 0xcda   :  { %669 = vrot.lane.b32.xlu0 %v1385_v60, %s1487_s19 }
 0xcdb   :  { %v1387_v61 = vpop.eup %1386 }
 0xcdc   :  { %671 = vrot.lane.b32.xlu1 %v1387_v61, %s1487_s19 }
 0xcdd   :  { %v689_v62 = vpop.permute.xlu0 %688 }
 0xcde   :  { %vm693_vm6 = vcmp.eq.s32.totalorder %v689_v62, 1 }
 0xcdf   :  { %v692_v63 = vpop.permute.xlu1 %691 }
 0xce0   :  { %vm694_vm7 = vcmp.eq.s32.totalorder %v692_v63, 1 }
 0xd4c   :  { %v670_v4 = vpop.permute.xlu0 %669 }
 0xd4d   :  { %v675_v6 = vmul.f32 %v670_v4, %v665_v0 }
 0xd4e   :  { %v672_v10 = vpop.permute.xlu1 %671 }
 0xd4f   :  { %v679_v11 = vadd.f32 %v677_v5, %v675_v6  ;;  %v676_v13 = vmul.f32 %v672_v10, %v666_v7 }
 0xd51   :  { %v680_v14 = vadd.f32 %v678_v12, %v676_v13  ;;  %v1730_v15 = vsel %vm693_vm6, %v679_v11, %v1701_v25  ;;  %v1218_v12 = vld [vmem:[#allocation4 + $0x30] sm:$0xff]  }
 0xd52   :  { %v1219_v13 = vunpack.c.l.bf16 %v1218_v12 }
 0xd53   :  { %v1733_v16 = vsel %vm694_vm7, %v680_v14, %v1704_v26  ;;  %v1220_v14 = vunpack.c.h.bf16 %v1218_v12 }
 0xd54   :  { %v702_v17 = vpack.c.bf16 %v1733_v16, %v1730_v15 }
 0xd56   :  { %704 = vrot.lane.b32.xlu0 %v702_v17, %s1487_s19 }
 0xdc8   :  { %v705_v18 = vpop.permute.xlu0 %704 }
 0xdc9   :  { %1294 = vmatmul.mubr.msk.bf16.vlgmr.msra.gmra.mrb[8].mxu1 %vm45_vm0, %v705_v18 }
 0xdca   :  { %1306 = vmatpush3.bf16.msra.mxu1 %v1556_v2  ;;  %1309 = vmatprep.mubr.msk.bf16.mxu1 %vm1484_vm1, %v1483_v1  ;;  %v1214_v2 = vld [vmem:[#allocation4 + $0x28] sm:$0xff]   ;;  %vm1177_vm1 = vcmp.gt.s32.totalorder %v1596_v27, 5 }
 0xdcb   :  { %1307 = vmatprep.subr.bf16.mxu1 %v1483_v1  ;;  %v1215_v25 = vunpack.c.l.bf16 %v1214_v2  ;;  %v1216_v26 = vunpack.c.h.bf16 %v1214_v2  ;;  %v808_v41 = vsel %vm1177_vm1, 1, %v1485_v8 }
 0xdce   :  { %1308 = vmatpush3.bf16.msra.mxu1 %v1561_v3 }
 0xe9c   :  { %v743_v19 = vpop.f32.mrb[8].mxu1 }
 0xe9d   :  { %v1295_v20 = vpop.f32.mrb[9].mxu1  ;;  %v764_v21 = vadd.f32 %v743_v19, %v1587_v9  ;;  %v750_v28 = vadd.f32 %v1215_v25, %v743_v19 }
 0xe9e   :  { %v746_v22 = vpop.f32.mrb[10].mxu1 }
 0xe9f   :  { %768 = vrot.lane.b32.xlu1 %v764_v21, %s1481_s8  ;;  %v1296_v23 = vpop.f32.mrb[11].mxu1  ;;  %v765_v24 = vadd.f32 %v746_v22, %v1587_v9  ;;  %v751_v29 = vadd.f32 %v1216_v26, %v746_v22  ;;  %v1175_v1 = vmul.f32 -1.442695, %v750_v28 }
 0xea1   :  { %770 = vrot.lane.b32.xlu0 %v765_v24, %s1481_s8  ;;  %v1176_v31 = vmul.f32 -1.442695, %v751_v29  ;;  %1388 = vpow2.f32 %v1175_v1  ;;  %v931_v29 = vsel %vm1182_vm11, 1, %v1485_v8  ;;  %v932_v1 = vsel %vm1183_vm12, 1, %v1485_v8 }
 0xea3   :  { %1390 = vpow2.f32 %v1176_v31 }
 0xeab   :  { %v1389_v3 = vpop.eup %1388 }
 0xeac   :  { %v758_v33 = vadd.f32 1.0, %v1389_v3 }
 0xead   :  { %v1391_v32 = vpop.eup %1390 }
 0xeae   :  { %v759_v34 = vadd.f32 1.0, %v1391_v32  ;;  %1392 = vrcp.f32 %v758_v33 }
 0xeb0   :  { %1394 = vrcp.f32 %v759_v34 }
 0xeb8   :  { %v1393_v35 = vpop.eup %1392 }
 0xeb9   :  { %v788_v51 = vsub.f32 1.0, %v1393_v35  ;;  %v800_v53 = vmul.f32 %v1393_v35, %v1730_v15 }
 0xeba   :  { %v1395_v38 = vpop.eup %1394 }
 0xebb   :  { %v789_v55 = vsub.f32 1.0, %v1395_v38  ;;  %v801_v58 = vmul.f32 %v1395_v38, %v1733_v16 }
 0xf11   :  { %v769_v36 = vpop.permute.xlu1 %768 }
 0xf12   :  { %v774_v37 = vmul.f32 %v1393_v35, %v769_v36 }
 0xf13   :  { %v771_v39 = vpop.permute.xlu0 %770 }
 0xf14   :  { %v775_v40 = vmul.f32 %v1395_v38, %v771_v39  ;;  %778 = vrot.lane.b32.xlu1 %v774_v37, %s1481_s8 }
 0xf16   :  { %780 = vrot.lane.b32.xlu0 %v775_v40, %s1481_s8 }
 0xf18   :  { %811 = vperm.xlu1 %1324, %v808_v41  }
 0xf1a   :  { %814 = vperm.xlu0 %1325, %v809_v42  }
 0xf86   :  { %v779_v43 = vpop.permute.xlu1 %778 }
 0xf87   :  { %v784_v44 = vadd.f32 %v1215_v25, %v779_v43 }
 0xf88   :  { %v781_v45 = vpop.permute.xlu0 %780 }
 0xf89   :  { %1396 = vtanh.f32 %v784_v44  ;;  %v785_v46 = vadd.f32 %v1216_v26, %v781_v45 }
 0xf8b   :  { %1398 = vtanh.f32 %v785_v46 }
 0xf93   :  { %v1397_v47 = vpop.eup %1396 }
 0xf94   :  { %792 = vrot.lane.b32.xlu1 %v1397_v47, %s1487_s19 }
 0xf95   :  { %v1399_v48 = vpop.eup %1398 }
 0xf96   :  { %794 = vrot.lane.b32.xlu0 %v1399_v48, %s1487_s19 }
 0xf97   :  { %v812_v49 = vpop.permute.xlu1 %811 }
 0xf98   :  { %vm816_vm9 = vcmp.eq.s32.totalorder %v812_v49, 1 }
 0xf99   :  { %v815_v50 = vpop.permute.xlu0 %814 }
 0xf9a   :  { %vm817_vm10 = vcmp.eq.s32.totalorder %v815_v50, 1 }
0x1006   :  { %v793_v52 = vpop.permute.xlu1 %792 }
0x1007   :  { %v798_v54 = vmul.f32 %v793_v52, %v788_v51 }
0x1008   :  { %v795_v56 = vpop.permute.xlu0 %794 }
0x1009   :  { %v802_v57 = vadd.f32 %v800_v53, %v798_v54  ;;  %v799_v59 = vmul.f32 %v795_v56, %v789_v55 }
0x100b   :  { %v803_v60 = vadd.f32 %v801_v58, %v799_v59  ;;  %v1759_v61 = vsel %vm816_vm9, %v802_v57, %v1730_v15  ;;  %v1222_v58 = vld [vmem:[#allocation4 + $0x38] sm:$0xff]  }
0x100c   :  { %v1223_v59 = vunpack.c.l.bf16 %v1222_v58 }
0x100d   :  { %v1762_v62 = vsel %vm817_vm10, %v803_v60, %v1733_v16  ;;  %v1224_v60 = vunpack.c.h.bf16 %v1222_v58 }
0x100e   :  { %v825_v63 = vpack.c.bf16 %v1762_v62, %v1759_v61 }
0x1010   :  { %827 = vrot.lane.b32.xlu1 %v825_v63, %s1487_s19 }
0x1082   :  { %v828_v0 = vpop.permute.xlu1 %827 }
0x1083   :  { %1302 = vmatmul.mubr.msk.bf16.vlgmr.msra.gmra.mrb[12].mxu0 %vm45_vm0, %v828_v0 }
0x1156   :  { %v866_v4 = vpop.f32.mrb[12].mxu0 }
0x1157   :  { %v1303_v5 = vpop.f32.mrb[13].mxu0  ;;  %v887_v6 = vadd.f32 %v866_v4, %v1587_v9  ;;  %v873_v15 = vadd.f32 %v1219_v13, %v866_v4 }
0x1158   :  { %v869_v7 = vpop.f32.mrb[14].mxu0 }
0x1159   :  { %891 = vrot.lane.b32.xlu0 %v887_v6, %s1481_s8  ;;  %v1304_v10 = vpop.f32.mrb[15].mxu0  ;;  %v888_v11 = vadd.f32 %v869_v7, %v1587_v9  ;;  %v874_v16 = vadd.f32 %v1220_v14, %v869_v7  ;;  %v1180_v17 = vmul.f32 -1.442695, %v873_v15  ;;  %v1054_v15 = vsel %vm1187_vm15, 1, %v1485_v8 }
0x115b   :  { %893 = vrot.lane.b32.xlu1 %v888_v11, %s1481_s8  ;;  %v1181_v18 = vmul.f32 -1.442695, %v874_v16  ;;  %1400 = vpow2.f32 %v1180_v17  ;;  %v1055_v16 = vsel %vm1188_vm2, 1, %v1485_v8 }
0x115d   :  { %1402 = vpow2.f32 %v1181_v18 }
0x1165   :  { %v1401_v19 = vpop.eup %1400 }
0x1166   :  { %v881_v21 = vadd.f32 1.0, %v1401_v19 }
0x1167   :  { %v1403_v20 = vpop.eup %1402 }
0x1168   :  { %v882_v22 = vadd.f32 1.0, %v1403_v20  ;;  %1404 = vrcp.f32 %v881_v21 }
0x116a   :  { %1406 = vrcp.f32 %v882_v22 }
0x1172   :  { %v1405_v23 = vpop.eup %1404 }
0x1173   :  { %v911_v38 = vsub.f32 1.0, %v1405_v23  ;;  %v923_v40 = vmul.f32 %v1405_v23, %v1759_v61 }
0x1174   :  { %v1407_v25 = vpop.eup %1406 }
0x1175   :  { %v912_v42 = vsub.f32 1.0, %v1407_v25  ;;  %v924_v45 = vmul.f32 %v1407_v25, %v1762_v62 }
0x11cb   :  { %v892_v24 = vpop.permute.xlu0 %891 }
0x11cc   :  { %v897_v2 = vmul.f32 %v1405_v23, %v892_v24 }
0x11cd   :  { %v894_v26 = vpop.permute.xlu1 %893 }
0x11ce   :  { %v898_v28 = vmul.f32 %v1407_v25, %v894_v26  ;;  %901 = vrot.lane.b32.xlu0 %v897_v2, %s1481_s8 }
0x11d0   :  { %903 = vrot.lane.b32.xlu1 %v898_v28, %s1481_s8 }
0x11d2   :  { %934 = vperm.xlu0 %1325, %v931_v29  }
0x11d4   :  { %937 = vperm.xlu1 %1324, %v932_v1  }
0x1240   :  { %v902_v31 = vpop.permute.xlu0 %901 }
0x1241   :  { %v907_v3 = vadd.f32 %v1219_v13, %v902_v31 }
0x1242   :  { %v904_v32 = vpop.permute.xlu1 %903 }
0x1243   :  { %1408 = vtanh.f32 %v907_v3  ;;  %v908_v33 = vadd.f32 %v1220_v14, %v904_v32 }
0x1245   :  { %1410 = vtanh.f32 %v908_v33 }
0x124d   :  { %v1409_v34 = vpop.eup %1408 }
0x124e   :  { %915 = vrot.lane.b32.xlu0 %v1409_v34, %s1487_s19 }
0x124f   :  { %v1411_v35 = vpop.eup %1410 }
0x1250   :  { %917 = vrot.lane.b32.xlu1 %v1411_v35, %s1487_s19  ;;  %v1189_v35 = vld [vmem:[%s1833_s4] ss:$0 sm:$0xff]  ;;  %s1488_s4 = smov [#allocation7]  }
0x1251   :  { %v935_v36 = vpop.permute.xlu0 %934  ;;  %s1134_s22 = sshll.u32 %s1488_s4, 4  ;;  %s1135_s22 = int_to_ptr.vmem [resolvable:$true] %s1134_s22 }
0x1252   :  { %vm939_vm13 = vcmp.eq.s32.totalorder %v935_v36, 1  ;;  %s1454_s23 = scalar_lea.vmem %s1135_s22, 256  ;;  %p1459_p9 = scmp.lt.s32.totalorder %s1135_s22, %s1135_s22 }
0x1253   :  { %v938_v37 = vpop.permute.xlu1 %937  ;;  %p1455_p8 = scmp.ne.s32.totalorder %s1135_s22, %s1454_s23  ;;  %p1460_p10 = scmp.lt.s32.totalorder %s1454_s23, %s1454_s23 }
0x1254   :  { %vm940_vm14 = vcmp.eq.s32.totalorder %v938_v37, 1 }
0x1255   :  { %p1461_p11 = por %p1460_p10, %p1459_p9 }
0x1257   :  { %p1462_p12 = pnand %p1461_p11, %p1455_p8 }
0x12c0   :  { %v916_v39 = vpop.permute.xlu0 %915 }
0x12c1   :  { %v921_v41 = vmul.f32 %v916_v39, %v911_v38 }
0x12c2   :  { %v918_v43 = vpop.permute.xlu1 %917 }
0x12c3   :  { %v925_v44 = vadd.f32 %v923_v40, %v921_v41  ;;  %v922_v46 = vmul.f32 %v918_v43, %v912_v42  ;;  %v1190_v42 = vld [vmem:[#allocation3] ss:$0 sm:$0xff] }
0x12c5   :  { %v926_v47 = vadd.f32 %v924_v45, %v922_v46  ;;  %v1783_v48 = vsel %vm939_vm13, %v925_v44, %v1759_v61 }
0x12c7   :  { %v1786_v49 = vsel %vm940_vm14, %v926_v47, %v1762_v62 }
0x12c8   :  { %v948_v50 = vpack.c.bf16 %v1786_v49, %v1783_v48 }
0x12ca   :  { %950 = vrot.lane.b32.xlu0 %v948_v50, %s1487_s19 }
0x133c   :  { %v951_v51 = vpop.permute.xlu0 %950 }
0x133d   :  { %1310 = vmatmul.mubr.msk.bf16.vlgmr.msra.gmra.mrb[12].mxu1 %vm45_vm0, %v951_v51 }
0x1410   :  { %v989_v52 = vpop.f32.mrb[12].mxu1 }
0x1411   :  { %v1311_v53 = vpop.f32.mrb[13].mxu1  ;;  %v1010_v54 = vadd.f32 %v989_v52, %v1587_v9  ;;  %v996_v61 = vadd.f32 %v1223_v59, %v989_v52 }
0x1412   :  { %v992_v55 = vpop.f32.mrb[14].mxu1 }
0x1413   :  { %1014 = vrot.lane.b32.xlu1 %v1010_v54, %s1481_s8  ;;  %v1312_v56 = vpop.f32.mrb[15].mxu1  ;;  %v1011_v57 = vadd.f32 %v992_v55, %v1587_v9  ;;  %v997_v62 = vadd.f32 %v1224_v60, %v992_v55  ;;  %v1185_v63 = vmul.f32 -1.442695, %v996_v61 }
0x1415   :  { %1016 = vrot.lane.b32.xlu0 %v1011_v57, %s1481_s8  ;;  %v1186_v0 = vmul.f32 -1.442695, %v997_v62  ;;  %1412 = vpow2.f32 %v1185_v63 }
0x1417   :  { %1414 = vpow2.f32 %v1186_v0 }
0x141f   :  { %v1413_v4 = vpop.eup %1412 }
0x1420   :  { %v1004_v6 = vadd.f32 1.0, %v1413_v4 }
0x1421   :  { %v1415_v5 = vpop.eup %1414 }
0x1422   :  { %v1005_v7 = vadd.f32 1.0, %v1415_v5  ;;  %1416 = vrcp.f32 %v1004_v6 }
0x1424   :  { %1418 = vrcp.f32 %v1005_v7 }
0x142c   :  { %v1417_v10 = vpop.eup %1416 }
0x142d   :  { %v1034_v23 = vsub.f32 1.0, %v1417_v10  ;;  %v1046_v8 = vmul.f32 %v1417_v10, %v1783_v48 }
0x142e   :  { %v1419_v12 = vpop.eup %1418 }
0x142f   :  { %v1035_v25 = vsub.f32 1.0, %v1419_v12  ;;  %v1047_v29 = vmul.f32 %v1419_v12, %v1786_v49 }
0x1485   :  { %v1015_v11 = vpop.permute.xlu1 %1014 }
0x1486   :  { %v1020_v9 = vmul.f32 %v1417_v10, %v1015_v11 }
0x1487   :  { %v1017_v13 = vpop.permute.xlu0 %1016 }
0x1488   :  { %v1021_v14 = vmul.f32 %v1419_v12, %v1017_v13  ;;  %1024 = vrot.lane.b32.xlu1 %v1020_v9, %s1481_s8 }
0x148a   :  { %1026 = vrot.lane.b32.xlu0 %v1021_v14, %s1481_s8 }
0x148c   :  { %1057 = vperm.xlu1 %1324, %v1054_v15  }
0x148e   :  { %1060 = vperm.xlu0 %1325, %v1055_v16  }
0x14fa   :  { %v1025_v17 = vpop.permute.xlu1 %1024 }
0x14fb   :  { %v1030_v18 = vadd.f32 %v1223_v59, %v1025_v17 }
0x14fc   :  { %v1027_v19 = vpop.permute.xlu0 %1026 }
0x14fd   :  { %1420 = vtanh.f32 %v1030_v18  ;;  %v1031_v27 = vadd.f32 %v1224_v60, %v1027_v19 }
0x14ff   :  { %1422 = vtanh.f32 %v1031_v27 }
0x1507   :  { %v1421_v20 = vpop.eup %1420 }
0x1508   :  { %1038 = vrot.lane.b32.xlu1 %v1421_v20, %s1487_s19 }
0x1509   :  { %v1423_v21 = vpop.eup %1422 }
0x150a   :  { %1040 = vrot.lane.b32.xlu0 %v1423_v21, %s1487_s19 }
0x150b   :  { %v1058_v30 = vpop.permute.xlu1 %1057 }
0x150c   :  { %vm1062_vm3 = vcmp.eq.s32.totalorder %v1058_v30, 1 }
0x150d   :  { %v1061_v22 = vpop.permute.xlu0 %1060 }
0x150e   :  { %vm1063_vm4 = vcmp.eq.s32.totalorder %v1061_v22, 1 }
0x157a   :  { %v1039_v24 = vpop.permute.xlu1 %1038 }
0x157b   :  { %v1044_v2 = vmul.f32 %v1039_v24, %v1034_v23 }
0x157c   :  { %v1041_v26 = vpop.permute.xlu0 %1040 }
0x157d   :  { %v1048_v28 = vadd.f32 %v1046_v8, %v1044_v2  ;;  %v1045_v1 = vmul.f32 %v1041_v26, %v1035_v25 }
0x157f   :  { %v1049_v31 = vadd.f32 %v1047_v29, %v1045_v1  ;;  %v1064_v3 = vsel %vm1062_vm3, %v1048_v28, %v1783_v48 }
0x1580   :  { %1068 = vrot.lane.b32.xlu1 %v1064_v3, %s1487_s19 }
0x1581   :  { %v1065_v32 = vsel %vm1063_vm4, %v1049_v31, %v1786_v49 }
0x1582   :  { %1070 = vrot.lane.b32.xlu0 %v1065_v32, %s1487_s19 }
0x15f2   :  { %v1069_v33 = vpop.permute.xlu1 %1068 }
0x15f3   :  { %1074 = vst.msk [vmem:[#allocation2] sm:$0xff] %vm45_vm0, %v1069_v33 }
0x15f4   :  { %v1071_v34 = vpop.permute.xlu0 %1070 }
0x15f5   :  { %1075 = vst.msk [vmem:[#allocation2 + $0x8] sm:$0xff] %vm45_vm0, %v1071_v34 }
0x15fa   :  { %v1079_v36 = vld [vmem:[#allocation2] sm:$0xff] }
0x15fb   :  { %v1088_v37 = vmul.f32 %v1189_v35, %v1079_v36 }
0x15fc   :  { %v1080_v38 = vld [vmem:[#allocation2 + $0x8] sm:$0xff] }
0x15fd   :  { %v1090_v39 = vsel %vm45_vm0, %v1088_v37, 0.0  ;;  %v1089_v40 = vmul.f32 %v1189_v35, %v1080_v38 }
0x15fe   :  { %1091 = vadd.xlane.f32.xlu1 %v1090_v39 }
0x15ff   :  { %v1093_v41 = vsel %vm45_vm0, %v1089_v40, 0.0 }
0x1600   :  { %1094 = vadd.xlane.f32.xlu0 %v1093_v41 }
0x168b   :  { %v1092_v43 = vpop.xlane.xlu1 %1091 }
0x168c   :  { %v1103_v44 = vadd.f32 %v1190_v42, %v1092_v43 }
0x168d   :  { %v1095_v45 = vpop.xlane.xlu0 %1094 }
0x168e   :  { %v1191_v46 = vmul.f32 -1.442695, %v1103_v44  ;;  %v1104_v47 = vadd.f32 %v1190_v42, %v1095_v45 }
0x1690   :  { %1424 = vpow2.f32 %v1191_v46  ;;  %v1192_v48 = vmul.f32 -1.442695, %v1104_v47 }
0x1692   :  { %1426 = vpow2.f32 %v1192_v48 }
0x169a   :  { %v1425_v49 = vpop.eup %1424 }
0x169b   :  { %v1111_v50 = vadd.f32 1.0, %v1425_v49 }
0x169c   :  { %v1427_v51 = vpop.eup %1426 }
0x169d   :  { %1428 = vrcp.f32 %v1111_v50  ;;  %v1112_v52 = vadd.f32 1.0, %v1427_v51 }
0x169f   :  { %1430 = vrcp.f32 %v1112_v52 }
0x16a7   :  { %v1429_v53 = vpop.eup %1428 }
0x16a8   :  { %1119 = vperm.xlu0 %1325, %v1429_v53  }
0x16a9   :  { %v1431_v54 = vpop.eup %1430 }
0x16aa   :  { %1124 = vperm.xlu1 %1324, %v1431_v54  }
0x1727   :  { %v1120_v55 = vpop.permute.xlu0 %1119 }
0x1728   :  { %1127 = vst [vmem:[#allocation7] sm:$0xff] %v1120_v55 }
0x1729   :  { %v1125_v56 = vpop.permute.xlu1 %1124 }
0x172a   :  { %1128 = vst [vmem:[#allocation7 + $0x8] sm:$0xff] %v1125_v56 }
0x172b   :  { %1465 = shalt.err (!%p1462_p12)
}
0x172c   :  { %s1466_s26 = scalar_lea.hbm %s1835_s6, 256 }
0x172d   :  { %p1467_p13 = scmp.ne.s32.totalorder %s1835_s6, %s1466_s26  ;;  %p1470_p0 = scmp.lt.u32.totalorder %s1466_s26, %s1835_s6 }
0x172f   :  { %p1472_p1 = pnand %p1470_p0, %p1467_p13 }
0x1731   :  { %1475 = shalt.err (!%p1472_p1)
}
0x1732   :  { %s1489_s7 = smov 128   ;;  %s1490_s5 = smov 8  }
0x1733   :  { %1140 = dma.vmem_to_hbm [thread:$0]  %s1135_s22, 256, %s1835_s6, [#allocation6], %s1489_s7, %s1489_s7, %s1490_s5  }
0x1734   :  { %1478 = dma.done.wait [#allocation6], 256  }
0x1735   :  { %1479 = vsyncadd [#allocation6], 4294967040 }
0x1736   :  { %1144 = vsyncpa [#allocation5], 1 }
0x1737   :  { %1145 = vsyncpa [#allocation6], 1 }

</bundles_post_ra>
